<compile_context>
chip_gen: v7x
topology: tpu7x:2x2x1
jax: 0.10.0
libtpu: 0.0.40
codegen_flags: <defaults>
</compile_context>

<pallas_src>
import functools

import jax
import jax.numpy as jnp
from jax.experimental import pallas as pl
from jax.experimental.pallas import tpu as pltpu

_LANE = 128     # TPU lane width (last dim)
_SUBLANE = 8    # f32 sublane width (second-to-last dim)


def _round_up(x, m):
    return (x + m - 1) // m * m


def _cdiv(a, b):
    return -(-a // b)


def _tpu_generation():
    """Best-effort TPU generation (5, 6, 7, ...) parsed from device_kind; None if unknown."""
    try:
        kind = jax.devices()[0].device_kind.lower()
    except Exception:
        return None
    for tok in kind.replace("tpu", " ").split():
        if len(tok) >= 2 and tok[0] == "v" and tok[1].isdigit():
            return int(tok[1])
    return None


_WEIGHT_SPEC_KW = None


def _weight_spec_kwargs():
    """Extra BlockSpec kwargs for grid-invariant weights: single-buffer them
    (pipeline_mode=pl.Buffered(1)) when supported; probed once with a tiny kernel."""
    global _WEIGHT_SPEC_KW
    if _WEIGHT_SPEC_KW is not None:
        return _WEIGHT_SPEC_KW
    kw = {}
    if hasattr(pl, "Buffered"):
        try:
            def _probe(x_ref, o_ref):
                o_ref[...] = x_ref[...] + 1.0

            x = jnp.zeros((_SUBLANE, _LANE), jnp.float32)
            pl.pallas_call(
                _probe,
                out_shape=jax.ShapeDtypeStruct((_SUBLANE, _LANE), jnp.float32),
                grid=(1,),
                in_specs=[pl.BlockSpec((_SUBLANE, _LANE), lambda i: (0, 0),
                                       pipeline_mode=pl.Buffered(1))],
                out_specs=pl.BlockSpec((_SUBLANE, _LANE), lambda i: (0, 0)),
            )(x).block_until_ready()
            kw = {"pipeline_mode": pl.Buffered(1)}
        except Exception:
            kw = {}
    _WEIGHT_SPEC_KW = kw
    return kw


# ---------------------------------------------------------------------------
# Kernels
# ---------------------------------------------------------------------------

def _decoder_fused_kernel(z_ref, w1_ref, b1_ref, w2_ref, b2_ref, w3_ref, b3_ref,
                          out_ref, *, compute_dtype, act_dtype):
    # MXU operands in compute_dtype (f32 or bf16); accumulation is always f32
    # (preferred_element_type).  Bias-add in f32; tanh in act_dtype (bf16 on v6e/v7x
    # bf16 path -> EUP bf16 rate, f32 on v5e).
    # NOTE: the f32 path uses default MXU precision; pass precision=lax.Precision.HIGHEST
    # to the dots if strict f32 accumulation over large K is required.
    z = z_ref[...].astype(compute_dtype)
    a1 = jnp.dot(z, w1_ref[...], preferred_element_type=jnp.float32) + b1_ref[...]
    h1 = jnp.tanh(a1.astype(act_dtype))
    a2 = jnp.dot(h1.astype(compute_dtype), w2_ref[...],
                 preferred_element_type=jnp.float32) + b2_ref[...]
    h2 = jnp.tanh(a2.astype(act_dtype))
    out_ref[...] = (jnp.dot(h2.astype(compute_dtype), w3_ref[...],
                            preferred_element_type=jnp.float32)
                    + b3_ref[...]).astype(out_ref.dtype)


def _linear_act_kernel(x_ref, w_ref, b_ref, o_ref, acc_ref, *,
                       apply_tanh, compute_dtype, act_dtype):
    # One tile of y = act(x @ w + b), accumulated over the K grid axis in f32 VMEM.
    k = pl.program_id(2)

    @pl.when(k == 0)
    def _():
        acc_ref[...] = jnp.zeros_like(acc_ref)

    acc_ref[...] += jnp.dot(x_ref[...].astype(compute_dtype), w_ref[...],
                            preferred_element_type=jnp.float32)

    @pl.when(k == pl.num_programs(2) - 1)
    def _():
        y = acc_ref[...] + b_ref[...]
        if apply_tanh:
            y = jnp.tanh(y.astype(act_dtype))
        o_ref[...] = y.astype(o_ref.dtype)


# ---------------------------------------------------------------------------
# Wrappers
# ---------------------------------------------------------------------------

def prepare_decoder_params(w1, b1, w2, b2, w3, b3, *, use_bf16=None):
    """Pad / cast parameters ONCE (hoisted out of the per-call path).

    Weights are stored (in, out) = transpose of PyTorch nn.Linear.weight.  Hidden and
    output feature dims are zero-padded to multiples of 128 (exact: padded weight
    rows/cols and bias entries are zero, so padded hidden features are tanh(0)=0 and
    contribute nothing downstream).  The latent dim is left un-padded.  bf16 weights
    default to ON for v6e/v7x.
    """
    if use_bf16 is None:
        gen = _tpu_generation()
        use_bf16 = gen is not None and gen >= 6
    w_dtype = jnp.bfloat16 if use_bf16 else jnp.float32

    latent_dim, hidden_dim = w1.shape
    output_dim = w3.shape[1]
    hp = _round_up(hidden_dim, _LANE)
    dp = _round_up(output_dim, _LANE)

    def pad_mat(a, rows, cols, dtype):
        a = jnp.asarray(a, jnp.float32)
        return jnp.pad(a, ((0, rows - a.shape[0]), (0, cols - a.shape[1]))).astype(dtype)

    def pad_bias(bvec, cols):
        bvec = jnp.asarray(bvec, jnp.float32).reshape(1, -1)
        return jnp.pad(bvec, ((0, 0), (0, cols - bvec.shape[1])))  # stays f32

    w1p = pad_mat(w1, latent_dim, hp, w_dtype)
    w2p = pad_mat(w2, hp, hp, w_dtype)
    w3p = pad_mat(w3, hp, dp, w_dtype)
    b1p = pad_bias(b1, hp)
    b2p = pad_bias(b2, hp)
    b3p = pad_bias(b3, dp)
    return (w1p, b1p, w2p, b2p, w3p, b3p)


def _pick_block(dim, cap):
    """Largest multiple of 128 dividing `dim` (itself a multiple of 128), <= cap."""
    best = _LANE
    b = _LANE
    while b <= min(dim, cap):
        if dim % b == 0:
            best = b
        b += _LANE
    return best


def _linear_layer(x, w, b, *, apply_tanh, compute_dtype, act_dtype, out_dtype,
                  block_m, vmem_limit):
    n, kdim = x.shape
    odim = w.shape[1]
    bk = _pick_block(kdim, 512) if kdim % _LANE == 0 else kdim   # tiny latent: full K
    bn = _pick_block(odim, 512)
    grid = (n // block_m, odim // bn, kdim // bk)
    return pl.pallas_call(
        functools.partial(_linear_act_kernel, apply_tanh=apply_tanh,
                          compute_dtype=compute_dtype, act_dtype=act_dtype),
        out_shape=jax.ShapeDtypeStruct((n, odim), out_dtype),
        grid=grid,
        in_specs=[
            pl.BlockSpec((block_m, bk), lambda i, j, k: (i, k)),
            pl.BlockSpec((bk, bn), lambda i, j, k: (k, j)),
            pl.BlockSpec((1, bn), lambda i, j, k: (0, j)),
        ],
        out_specs=pl.BlockSpec((block_m, bn), lambda i, j, k: (i, j)),
        scratch_shapes=[pltpu.VMEM((block_m, bn), jnp.float32)],
        compiler_params=pltpu.CompilerParams(
            dimension_semantics=("parallel", "parallel", "arbitrary"),
            vmem_limit_bytes=vmem_limit),
    )(x, w, b)


@functools.partial(jax.jit, static_argnames=("output_dim", "force_layerwise"))
def decoder_forward(z, params, *, output_dim, force_layerwise=False):
    """Decoder forward pass.  `params` must come from prepare_decoder_params()."""
    w1p, b1p, w2p, b2p, w3p, b3p = params
    n, latent_dim = z.shape
    hp = w1p.shape[1]
    dp = w3p.shape[1]
    use_bf16 = w1p.dtype == jnp.bfloat16
    compute_dtype = jnp.bfloat16 if use_bf16 else jnp.float32

    gen = _tpu_generation()
    # bf16 tanh / bias cast only where VPU/EUP have a native bf16 path (v6e+).
    act_dtype = jnp.bfloat16 if (use_bf16 and gen is not None and gen >= 6) else jnp.float32
    # VMEM budget: leave headroom on v7x (64 MiB physical per TensorCore).
    vmem_limit = (48 << 20) if (gen is not None and gen >= 7) else (64 << 20)
    max_block_n = 512 if (gen is None or gen >= 7) else 1024
    min_steps = 2 if (gen is not None and gen >= 7) else 1   # keep both v7x TCs busy

    # Batch tile: divides the padded batch evenly (avoids ~2x waste when n is just over
    # the cap), sublane (8) aligned.
    steps = max(_cdiv(n, max_block_n), min_steps)
    block_n = _round_up(_cdiv(n, steps), _SUBLANE)
    n_pad = _round_up(n, block_n)
    grid_n = n_pad // block_n

    # Only the batch dim of z is padded; latent dim stays un-padded (full-dim block).
    z_p = jnp.pad(z.astype(jnp.float32), ((0, n_pad - n), (0, 0)))

    itemsize = 2 if use_bf16 else 4
    weight_bytes = (latent_dim * hp + hp * hp + hp * dp) * itemsize
    fused_ok = (not force_layerwise) and weight_bytes <= vmem_limit // 3

    if fused_ok:
        rep = lambda i: (0, 0)
        wkw = _weight_spec_kwargs()   # single-buffer grid-invariant weights if supported
        cost = pl.CostEstimate(
            flops=2 * n_pad * (latent_dim * hp + hp * hp + hp * dp),
            transcendentals=2 * n_pad * hp,
            bytes_accessed=(n_pad * latent_dim * 4 + weight_bytes
                            + (2 * hp + dp) * 4 + n_pad * dp * 4),
        )
        out_p = pl.pallas_call(
            functools.partial(_decoder_fused_kernel,
                              compute_dtype=compute_dtype, act_dtype=act_dtype),
            out_shape=jax.ShapeDtypeStruct((n_pad, dp), jnp.float32),
            grid_spec=pl.GridSpec(
                grid=(grid_n,),
                in_specs=[
                    pl.BlockSpec((block_n, latent_dim), lambda i: (i, 0)),  # z
                    pl.BlockSpec((latent_dim, hp), rep, **wkw),             # w1
                    pl.BlockSpec((1, hp), rep, **wkw),                      # b1
                    pl.BlockSpec((hp, hp), rep, **wkw),                     # w2
                    pl.BlockSpec((1, hp), rep, **wkw),                      # b2
                    pl.BlockSpec((hp, dp), rep, **wkw),                     # w3
                    pl.BlockSpec((1, dp), rep, **wkw),                      # b3
                ],
                out_specs=pl.BlockSpec((block_n, dp), lambda i: (i, 0)),
            ),
            compiler_params=pltpu.CompilerParams(
                dimension_semantics=("parallel",),
                vmem_limit_bytes=vmem_limit),
            cost_estimate=cost,
        )(z_p, w1p, b1p, w2p, b2p, w3p, b3p)
    else:
        # Weights too large to stay fully resident (e.g. hidden >= 2048 f32 on v7x):
        # per-layer tiled matmuls with an f32 VMEM accumulator over the K grid axis.
        inter_dtype = compute_dtype
        h1 = _linear_layer(z_p, w1p, b1p, apply_tanh=True, compute_dtype=compute_dtype,
                           act_dtype=act_dtype, out_dtype=inter_dtype,
                           block_m=block_n, vmem_limit=vmem_limit)
        h2 = _linear_layer(h1, w2p, b2p, apply_tanh=True, compute_dtype=compute_dtype,
                           act_dtype=act_dtype, out_dtype=inter_dtype,
                           block_m=block_n, vmem_limit=vmem_limit)
        out_p = _linear_layer(h2, w3p, b3p, apply_tanh=False, compute_dtype=compute_dtype,
                              act_dtype=act_dtype, out_dtype=jnp.float32,
                              block_m=block_n, vmem_limit=vmem_limit)

    return out_p[:n, :output_dim]


# ---------------------------------------------------------------------------
# Reference / init / demo
# ---------------------------------------------------------------------------

def init_decoder_params(key, latent_dim, hidden_dim, output_dim):
    """Deterministic init mimicking nn.Linear (uniform +/- 1/sqrt(fan_in)).
    Weights stored transposed relative to PyTorch: shape (in, out)."""
    ks = jax.random.split(key, 6)

    def linear(kw, kb, fan_in, fan_out):
        bound = 1.0 / jnp.sqrt(float(fan_in))
        w = jax.random.uniform(kw, (fan_in, fan_out), jnp.float32,
                               minval=-bound, maxval=bound)
        b = jax.random.uniform(kb, (1, fan_out), jnp.float32,
                               minval=-bound, maxval=bound)
        return w, b

    w1, b1 = linear(ks[0], ks[1], latent_dim, hidden_dim)
    w2, b2 = linear(ks[2], ks[3], hidden_dim, hidden_dim)
    w3, b3 = linear(ks[4], ks[5], hidden_dim, output_dim)
    return w1, b1, w2, b2, w3, b3


def decoder_reference(z, w1, b1, w2, b2, w3, b3):
    h1 = jnp.tanh(z @ w1 + b1)
    h2 = jnp.tanh(h1 @ w2 + b2)
    return h2 @ w3 + b3


if __name__ == "__main__":
    # Shapes consistent with the module/spec: z is (214, 2); small hidden / output.
    N, LATENT, HIDDEN, INPUT_DIM = 214, 2, 32, 16

    key = jax.random.PRNGKey(0)
    kz, kp = jax.random.split(key)
    z = jax.random.normal(kz, (N, LATENT), dtype=jnp.float32)
    raw = init_decoder_params(kp, LATENT, HIDDEN, INPUT_DIM)

    x_ref = decoder_reference(z, *raw)

    # f32 path (exact match with the reference); params padded/cast once, outside jit.
    params_f32 = prepare_decoder_params(*raw, use_bf16=False)
    x_hat = jax.block_until_ready(
        decoder_forward(z, params_f32, output_dim=INPUT_DIM))
    assert x_hat.shape == (N, INPUT_DIM)
    assert jnp.allclose(x_hat, x_ref, atol=1e-5, rtol=1e-5), (
        float(jnp.max(jnp.abs(x_hat - x_ref))))

    # bf16 MXU path (default on v6e/v7x): f32 accumulate, bf16 tanh on v6e+.
    params_bf16 = prepare_decoder_params(*raw, use_bf16=True)
    x_bf16 = jax.block_until_ready(
        decoder_forward(z, params_bf16, output_dim=INPUT_DIM))
    assert jnp.allclose(x_bf16, x_ref, atol=5e-2, rtol=5e-2), (
        float(jnp.max(jnp.abs(x_bf16 - x_ref))))

    # Layer-wise tiled fallback (selected automatically when weights don't fit the
    # per-generation VMEM budget, e.g. hidden >= 2048 f32 on v7x); exercised here.
    x_lw = jax.block_until_ready(
        decoder_forward(z, params_f32, output_dim=INPUT_DIM, force_layerwise=True))
    assert jnp.allclose(x_lw, x_ref, atol=1e-5, rtol=1e-5), (
        float(jnp.max(jnp.abs(x_lw - x_ref))))

    print("KERNEL_OK")
</pallas_src>

<mosaic_0001>
module attributes {stable_mosaic.version = 11 : i64} {
  func.func @_decoder_fused_kernel(%arg0: i32, %arg1: memref<216x2xf32, #tpu.memory_space<vmem>>, %arg2: memref<2x128xf32, #tpu.memory_space<vmem>>, %arg3: memref<1x128xf32, #tpu.memory_space<vmem>>, %arg4: memref<128x128xf32, #tpu.memory_space<vmem>>, %arg5: memref<1x128xf32, #tpu.memory_space<vmem>>, %arg6: memref<128x128xf32, #tpu.memory_space<vmem>>, %arg7: memref<1x128xf32, #tpu.memory_space<vmem>>, %arg8: memref<216x128xf32, #tpu.memory_space<vmem>>) attributes {dimension_semantics = [#tpu.dimension_semantics<parallel>], iteration_bounds = array<i64: 1>, scalar_prefetch = 0 : i64, scratch_operands = 0 : i64, tpu.core_type = #tpu.core_type<tc>, window_params = [{transform_indices = @transform_0, window_bounds = array<i64: 216, 2>}, {pipeline_mode = #tpu.pipeline_mode<synchronous>, transform_indices = @transform_1, window_bounds = array<i64: 2, 128>}, {pipeline_mode = #tpu.pipeline_mode<synchronous>, transform_indices = @transform_2, window_bounds = array<i64: 1, 128>}, {pipeline_mode = #tpu.pipeline_mode<synchronous>, transform_indices = @transform_3, window_bounds = array<i64: 128, 128>}, {pipeline_mode = #tpu.pipeline_mode<synchronous>, transform_indices = @transform_4, window_bounds = array<i64: 1, 128>}, {pipeline_mode = #tpu.pipeline_mode<synchronous>, transform_indices = @transform_5, window_bounds = array<i64: 128, 128>}, {pipeline_mode = #tpu.pipeline_mode<synchronous>, transform_indices = @transform_6, window_bounds = array<i64: 1, 128>}, {transform_indices = @transform_7, window_bounds = array<i64: 216, 128>}]} {
    %c0 = arith.constant 0 : index
    %c0_0 = arith.constant 0 : index
    %0 = vector.load %arg1[%c0, %c0_0] : memref<216x2xf32, #tpu.memory_space<vmem>>, vector<216x2xf32>
    %c0_1 = arith.constant 0 : index
    %c0_2 = arith.constant 0 : index
    %1 = vector.load %arg2[%c0_1, %c0_2] : memref<2x128xf32, #tpu.memory_space<vmem>>, vector<2x128xf32>
    %cst = arith.constant dense<0.000000e+00> : vector<216x128xf32>
    %2 = tpu.matmul %0, %1, %cst {dimension_numbers = #tpu.dot_dimension_numbers<[1], [0], [0], [1], [0, 0, 1, 1], [], []>} : vector<216x2xf32>, vector<2x128xf32>, vector<216x128xf32> -> vector<216x128xf32>
    %c0_3 = arith.constant 0 : index
    %c0_4 = arith.constant 0 : index
    %3 = vector.load %arg3[%c0_3, %c0_4] : memref<1x128xf32, #tpu.memory_space<vmem>>, vector<1x128xf32>
    %4 = vector.broadcast %3 : vector<1x128xf32> to vector<216x128xf32>
    %5 = arith.addf %2, %4 : vector<216x128xf32>
    %6 = math.tanh %5 : vector<216x128xf32>
    %c0_5 = arith.constant 0 : index
    %c0_6 = arith.constant 0 : index
    %7 = vector.load %arg4[%c0_5, %c0_6] : memref<128x128xf32, #tpu.memory_space<vmem>>, vector<128x128xf32>
    %cst_7 = arith.constant dense<0.000000e+00> : vector<216x128xf32>
    %8 = tpu.matmul %6, %7, %cst_7 {dimension_numbers = #tpu.dot_dimension_numbers<[1], [0], [0], [1], [0, 0, 1, 1], [], []>} : vector<216x128xf32>, vector<128x128xf32>, vector<216x128xf32> -> vector<216x128xf32>
    %c0_8 = arith.constant 0 : index
    %c0_9 = arith.constant 0 : index
    %9 = vector.load %arg5[%c0_8, %c0_9] : memref<1x128xf32, #tpu.memory_space<vmem>>, vector<1x128xf32>
    %10 = vector.broadcast %9 : vector<1x128xf32> to vector<216x128xf32>
    %11 = arith.addf %8, %10 : vector<216x128xf32>
    %12 = math.tanh %11 : vector<216x128xf32>
    %c0_10 = arith.constant 0 : index
    %c0_11 = arith.constant 0 : index
    %13 = vector.load %arg6[%c0_10, %c0_11] : memref<128x128xf32, #tpu.memory_space<vmem>>, vector<128x128xf32>
    %cst_12 = arith.constant dense<0.000000e+00> : vector<216x128xf32>
    %14 = tpu.matmul %12, %13, %cst_12 {dimension_numbers = #tpu.dot_dimension_numbers<[1], [0], [0], [1], [0, 0, 1, 1], [], []>} : vector<216x128xf32>, vector<128x128xf32>, vector<216x128xf32> -> vector<216x128xf32>
    %c0_13 = arith.constant 0 : index
    %c0_14 = arith.constant 0 : index
    %15 = vector.load %arg7[%c0_13, %c0_14] : memref<1x128xf32, #tpu.memory_space<vmem>>, vector<1x128xf32>
    %16 = vector.broadcast %15 : vector<1x128xf32> to vector<216x128xf32>
    %17 = arith.addf %14, %16 : vector<216x128xf32>
    %c0_15 = arith.constant 0 : index
    %c0_16 = arith.constant 0 : index
    %18 = vector.load %arg8[%c0_15, %c0_16] : memref<216x128xf32, #tpu.memory_space<vmem>>, vector<216x128xf32>
    tpu.vector_store %arg8[%c0_15, %c0_16], %17 {strides = array<i32>} : memref<216x128xf32, #tpu.memory_space<vmem>>, vector<216x128xf32>,
    return
  }
  func.func @transform_0(%arg0: i32) -> (i32, i32) {
    %c0_i32 = arith.constant 0 : i32
    %c0_i32_0 = arith.constant 0 : i32
    return %arg0, %c0_i32 : i32, i32
  }
  func.func @transform_1(%arg0: i32) -> (i32, i32) {
    %c0_i32 = arith.constant 0 : i32
    %c0_i32_0 = arith.constant 0 : i32
    %c0_i32_1 = arith.constant 0 : i32
    return %c0_i32, %c0_i32_0 : i32, i32
  }
  func.func @transform_2(%arg0: i32) -> (i32, i32) {
    %c0_i32 = arith.constant 0 : i32
    %c0_i32_0 = arith.constant 0 : i32
    %c0_i32_1 = arith.constant 0 : i32
    return %c0_i32, %c0_i32_0 : i32, i32
  }
  func.func @transform_3(%arg0: i32) -> (i32, i32) {
    %c0_i32 = arith.constant 0 : i32
    %c0_i32_0 = arith.constant 0 : i32
    %c0_i32_1 = arith.constant 0 : i32
    return %c0_i32, %c0_i32_0 : i32, i32
  }
  func.func @transform_4(%arg0: i32) -> (i32, i32) {
    %c0_i32 = arith.constant 0 : i32
    %c0_i32_0 = arith.constant 0 : i32
    %c0_i32_1 = arith.constant 0 : i32
    return %c0_i32, %c0_i32_0 : i32, i32
  }
  func.func @transform_5(%arg0: i32) -> (i32, i32) {
    %c0_i32 = arith.constant 0 : i32
    %c0_i32_0 = arith.constant 0 : i32
    %c0_i32_1 = arith.constant 0 : i32
    return %c0_i32, %c0_i32_0 : i32, i32
  }
  func.func @transform_6(%arg0: i32) -> (i32, i32) {
    %c0_i32 = arith.constant 0 : i32
    %c0_i32_0 = arith.constant 0 : i32
    %c0_i32_1 = arith.constant 0 : i32
    return %c0_i32, %c0_i32_0 : i32, i32
  }
  func.func @transform_7(%arg0: i32) -> (i32, i32) {
    %c0_i32 = arith.constant 0 : i32
    %c0_i32_0 = arith.constant 0 : i32
    return %arg0, %c0_i32 : i32, i32
  }
}

</mosaic_0001>

<bundles_post_ra>
// kernel: decoder_forward.1
= control target key start
LH: loop header
LB: loop body
LE: loop exit
PB: predicated region body
PF: predicated region fallthrough
CT: control target
= control target key end

     0   :  { %12 = vsyncpa [#allocation3], 0  ;;  %s2284_s0 = inlined_call_operand.hbm [shape: f32[216,2], index: 0, kind: input, shape index: {}]   ;;  %s2285_s1 = inlined_call_operand.hbm [shape: f32[2,128], index: 1, kind: input, shape index: {}]   ;;  %s2286_s2 = inlined_call_operand.hbm [shape: f32[1,128], index: 2, kind: input, shape index: {}]   ;;  %s2287_s3 = inlined_call_operand.hbm [shape: f32[128,128], index: 3, kind: input, shape index: {}]   ;;  %s2288_s4 = inlined_call_operand.hbm [shape: f32[1,128], index: 4, kind: input, shape index: {}]   ;;  %s2289_s5 = inlined_call_operand.hbm [shape: f32[128,128], index: 5, kind: input, shape index: {}]   ;;  %s2290_s6 = inlined_call_operand.hbm [shape: f32[1,128], index: 6, kind: input, shape index: {}]   ;;  %s2291_s7 = inlined_call_operand.hbm [shape: f32[216,128], index: 7, kind: output, shape index: {}]  }
   0x1   :  { %13 = vsyncpa [#allocation6], 0 }
   0x2   :  { %14 = vsyncpa [#allocation9], 0 }
   0x3   :  { %15 = vsyncpa [#allocation12], 0 }
   0x4   :  { %16 = vsyncpa [#allocation4], 0  ;;  %s1793_s24 = smov [#allocation5]   ;;  %s1607_s28 = scalar_lea.hbm %s2285_s1, 32 }
   0x5   :  { %s35_s25 = sshll.u32 %s1793_s24, 4  ;;  %p1608_p0 = scmp.ne.s32.totalorder %s2285_s1, %s1607_s28  ;;  %s36_s25 = int_to_ptr.vmem [resolvable:$true] %s35_s25 }
   0x6   :  { %p1611_p1 = scmp.lt.u32.totalorder %s1607_s28, %s2285_s1 }
   0x8   :  { %p1613_p2 = pnand %p1611_p1, %p1608_p0 }
   0xa   :  { %1616 = shalt.err (!%p1613_p2)
}
   0xb   :  { %s1617_s10 = scalar_lea.vmem %s36_s25, 32  ;;  %p1622_p4 = scmp.lt.s32.totalorder %s36_s25, %s36_s25 }
   0xc   :  { %p1618_p3 = scmp.ne.s32.totalorder %s36_s25, %s1617_s10  ;;  %p1623_p5 = scmp.lt.s32.totalorder %s1617_s10, %s1617_s10 }
   0xe   :  { %p1624_p6 = por %p1623_p5, %p1622_p4 }
  0x10   :  { %p1625_p7 = pnand %p1624_p6, %p1618_p3 }
  0x12   :  { %1628 = shalt.err (!%p1625_p7)
}
  0x13   :  { %38 = dma.hbm_to_vmem [thread:$0]  %s2285_s1, 32, %s36_s25, [#allocation6]  }
  0x14   :  { %s1794_s13 = smov [#allocation8]   ;;  %s1795_s15 = smov [#allocation11]  }
  0x15   :  { %s54_s14 = sshll.u32 %s1794_s13, 4  ;;  %s76_s16 = sshll.u32 %s1795_s15, 4  ;;  %s55_s14 = int_to_ptr.vmem [resolvable:$true] %s54_s14  ;;  %s77_s16 = int_to_ptr.vmem [resolvable:$true] %s76_s16 }
  0x16   :  { %s1629_s19 = scalar_lea.hbm %s2287_s3, 2048 }
  0x17   :  { %p1630_p8 = scmp.ne.s32.totalorder %s2287_s3, %s1629_s19  ;;  %p1633_p9 = scmp.lt.u32.totalorder %s1629_s19, %s2287_s3 }
  0x19   :  { %p1635_p10 = pnand %p1633_p9, %p1630_p8 }
  0x1b   :  { %1638 = shalt.err (!%p1635_p10)
}
  0x1c   :  { %s1639_s1 = scalar_lea.vmem %s55_s14, 2048  ;;  %p1644_p12 = scmp.lt.s32.totalorder %s55_s14, %s55_s14 }
  0x1d   :  { %p1640_p11 = scmp.ne.s32.totalorder %s55_s14, %s1639_s1  ;;  %p1645_p13 = scmp.lt.s32.totalorder %s1639_s1, %s1639_s1 }
  0x1f   :  { %p1646_p0 = por %p1645_p13, %p1644_p12 }
  0x21   :  { %p1647_p1 = pnand %p1646_p0, %p1640_p11 }
  0x23   :  { %1650 = shalt.err (!%p1647_p1)
}
  0x24   :  { %s1796_s24 = smov 128   ;;  %s1797_s25 = smov 8  }
  0x25   :  { %60 = dma.hbm_to_vmem [thread:$0]  %s2287_s3, 2048, %s55_s14, [#allocation9], %s1796_s24, %s1796_s24, %s1797_s25  }
  0x26   :  { %s1651_s30 = scalar_lea.hbm %s2289_s5, 2048 }
  0x27   :  { %p1652_p2 = scmp.ne.s32.totalorder %s2289_s5, %s1651_s30  ;;  %p1655_p3 = scmp.lt.u32.totalorder %s1651_s30, %s2289_s5 }
  0x29   :  { %p1657_p4 = pnand %p1655_p3, %p1652_p2 }
  0x2b   :  { %1660 = shalt.err (!%p1657_p4)
}
  0x2c   :  { %s1661_s12 = scalar_lea.vmem %s77_s16, 2048  ;;  %p1666_p6 = scmp.lt.s32.totalorder %s77_s16, %s77_s16 }
  0x2d   :  { %p1662_p5 = scmp.ne.s32.totalorder %s77_s16, %s1661_s12  ;;  %p1667_p7 = scmp.lt.s32.totalorder %s1661_s12, %s1661_s12 }
  0x2f   :  { %p1668_p8 = por %p1667_p7, %p1666_p6 }
  0x31   :  { %p1669_p9 = pnand %p1668_p8, %p1662_p5 }
  0x33   :  { %1672 = shalt.err (!%p1669_p9)
}
  0x34   :  { %82 = dma.hbm_to_vmem [thread:$0]  %s2289_s5, 2048, %s77_s16, [#allocation12], %s1796_s24, %s1796_s24, %s1797_s25  }
  0x35   :  { %s1798_s14 = smov [#allocation2]   ;;  %s1799_s17 = smov [#allocation7]  }
  0x36   :  { %s22_s15 = sshll.u32 %s1798_s14, 4  ;;  %s45_s18 = sshll.u32 %s1799_s17, 4  ;;  %s23_s15 = int_to_ptr.vmem [resolvable:$true] %s22_s15  ;;  %s46_s18 = int_to_ptr.vmem [resolvable:$true] %s45_s18 }
  0x37   :  { %s1673_s21 = scalar_lea.hbm %s2284_s0, 3456 }
  0x38   :  { %p1674_p10 = scmp.ne.s32.totalorder %s2284_s0, %s1673_s21  ;;  %p1677_p11 = scmp.lt.u32.totalorder %s1673_s21, %s2284_s0 }
  0x3a   :  { %p1679_p12 = pnand %p1677_p11, %p1674_p10 }
  0x3c   :  { %1682 = shalt.err (!%p1679_p12)
}
  0x3d   :  { %s1683_s5 = scalar_lea.vmem %s23_s15, 3456  ;;  %p1688_p0 = scmp.lt.s32.totalorder %s23_s15, %s23_s15 }
  0x3e   :  { %p1684_p13 = scmp.ne.s32.totalorder %s23_s15, %s1683_s5  ;;  %p1689_p1 = scmp.lt.s32.totalorder %s1683_s5, %s1683_s5 }
  0x40   :  { %p1690_p2 = por %p1689_p1, %p1688_p0 }
  0x42   :  { %p1691_p3 = pnand %p1690_p2, %p1684_p13 }
  0x44   :  { %1694 = shalt.err (!%p1691_p3)
}
  0x45   :  { %28 = dma.hbm_to_vmem [thread:$0]  %s2284_s0, 3456, %s23_s15, [#allocation3], %s1796_s24, %s1796_s24, %s1797_s25  }
  0x46   :  { %s1695_s30 = scalar_lea.hbm %s2286_s2, 16 }
  0x47   :  { %p1696_p4 = scmp.ne.s32.totalorder %s2286_s2, %s1695_s30  ;;  %p1699_p5 = scmp.lt.u32.totalorder %s1695_s30, %s2286_s2 }
  0x49   :  { %p1701_p6 = pnand %p1699_p5, %p1696_p4 }
  0x4b   :  { %1704 = shalt.err (!%p1701_p6)
}
  0x4c   :  { %s1705_s12 = scalar_lea.vmem %s46_s18, 16  ;;  %s1709_s3 = scalar_lea.vmem %s46_s18, 32 }
  0x4d   :  { %p1706_p7 = scmp.ne.s32.totalorder %s46_s18, %s1705_s12  ;;  %p1710_p8 = scmp.lt.s32.totalorder %s46_s18, %s46_s18 }
  0x4e   :  { %p1711_p9 = scmp.lt.s32.totalorder %s1709_s3, %s1705_s12 }
  0x50   :  { %p1712_p10 = por %p1711_p9, %p1710_p8 }
  0x52   :  { %p1713_p11 = pnand %p1712_p10, %p1706_p7 }
  0x54   :  { %1716 = shalt.err (!%p1713_p11)
}
  0x55   :  { %48 = dma.hbm_to_vmem [thread:$0]  %s2286_s2, 16, %s46_s18, [#allocation6]  }
  0x56   :  { %s1800_s14 = smov [#allocation10]   ;;  %s1801_s17 = smov [#allocation13]  }
  0x57   :  { %s67_s15 = sshll.u32 %s1800_s14, 4  ;;  %s89_s19 = sshll.u32 %s1801_s17, 4  ;;  %s68_s15 = int_to_ptr.vmem [resolvable:$true] %s67_s15  ;;  %s90_s19 = int_to_ptr.vmem [resolvable:$true] %s89_s19 }
  0x58   :  { %s1717_s22 = scalar_lea.hbm %s2288_s4, 16 }
  0x59   :  { %p1718_p12 = scmp.ne.s32.totalorder %s2288_s4, %s1717_s22  ;;  %p1721_p13 = scmp.lt.u32.totalorder %s1717_s22, %s2288_s4 }
  0x5b   :  { %p1723_p0 = pnand %p1721_p13, %p1718_p12 }
  0x5d   :  { %1726 = shalt.err (!%p1723_p0)
}
  0x5e   :  { %s1727_s2 = scalar_lea.vmem %s68_s15, 16  ;;  %s1731_s18 = scalar_lea.vmem %s68_s15, 32 }
  0x5f   :  { %p1728_p1 = scmp.ne.s32.totalorder %s68_s15, %s1727_s2  ;;  %p1732_p2 = scmp.lt.s32.totalorder %s68_s15, %s68_s15 }
  0x60   :  { %p1733_p3 = scmp.lt.s32.totalorder %s1731_s18, %s1727_s2 }
  0x62   :  { %p1734_p4 = por %p1733_p3, %p1732_p2 }
  0x64   :  { %p1735_p5 = pnand %p1734_p4, %p1728_p1 }
  0x66   :  { %1738 = shalt.err (!%p1735_p5)
}
  0x67   :  { %70 = dma.hbm_to_vmem [thread:$0]  %s2288_s4, 16, %s68_s15, [#allocation9]  }
  0x68   :  { %s1739_s30 = scalar_lea.hbm %s2290_s6, 16 }
  0x69   :  { %p1740_p6 = scmp.ne.s32.totalorder %s2290_s6, %s1739_s30  ;;  %p1743_p7 = scmp.lt.u32.totalorder %s1739_s30, %s2290_s6 }
  0x6b   :  { %p1745_p8 = pnand %p1743_p7, %p1740_p6 }
  0x6d   :  { %1748 = shalt.err (!%p1745_p8)
}
  0x6e   :  { %s1749_s12 = scalar_lea.vmem %s90_s19, 16  ;;  %s1753_s3 = scalar_lea.vmem %s90_s19, 32 }
  0x6f   :  { %p1750_p9 = scmp.ne.s32.totalorder %s90_s19, %s1749_s12  ;;  %p1754_p10 = scmp.lt.s32.totalorder %s90_s19, %s90_s19 }
  0x70   :  { %p1755_p11 = scmp.lt.s32.totalorder %s1753_s3, %s1749_s12 }
  0x72   :  { %p1756_p12 = por %p1755_p11, %p1754_p10 }
  0x74   :  { %p1757_p13 = pnand %p1756_p12, %p1750_p9 }
  0x76   :  { %1760 = shalt.err (!%p1757_p13)
}
  0x77   :  { %92 = dma.hbm_to_vmem [thread:$0]  %s2290_s6, 16, %s90_s19, [#allocation12]  }
  0x78   :  { %1783 = dma.done.wait [#allocation3], 3456  }
  0x79   :  { %1784 = vsyncadd [#allocation3], 4294963840 }
  0x7a   :  { %1785 = dma.done.wait [#allocation6], 48  }
  0x7b   :  { %1786 = vsyncadd [#allocation6], 4294967248 }
  0x7c   :  { %1787 = dma.done.wait [#allocation9], 2064  }
  0x7d   :  { %1788 = vsyncadd [#allocation9], 4294965232 }
  0x7e   :  { %1789 = dma.done.wait [#allocation12], 2064  }
  0x7f   :  { %1790 = vsyncadd [#allocation12], 4294965232  ;;  %v1802_v0 = vmov 0.0   ;;  %vm1803_vm0 = vmmov 0   ;;  %vm231_vm1 = vcmask 1041408   ;;  %vm149_vm2 = vcmask 15360  }
  0x80   :  { %1127 = vmatprep.subr.mxu0 %v1802_v0  ;;  %1129 = vmatprep.mubr.msk.f32.mxu0 %vm1803_vm0, %v1802_v0  ;;  %v141_v1 = vld [vmem:[#allocation5] sm:$0x3]  ;;  %v114_v2 = vld [vmem:[#allocation2] sm:$0xff]  ;;  %v1804_v3 = vmov 0.0|0.0   ;;  %v115_v4 = vld [vmem:[#allocation2 + $0x8] sm:$0xff]  ;;  %s1805_s6 = smov [#allocation14]  }
  0x81   :  { %1484 = vmatprep.subr.mxu1 %v1802_v0  ;;  %1171 = vmatprep.mubr.msk.f32.mxu1 %vm1803_vm0, %v1802_v0  ;;  %v128_v5 = vld [vmem:[#allocation2 + $0x70] sm:$0xff]  ;;  %v129_v7 = vld [vmem:[#allocation2 + $0x78] sm:$0xff]  ;;  %v463_v9 = vld [vmem:[#allocation8 + $0x8] sm:$0xff]  ;;  %s967_s13 = sshll.u32 %s1805_s6, 4  ;;  %s968_s13 = int_to_ptr.vmem [resolvable:$true] %s967_s13 }
  0x82   :  { %1128 = vmatpush3.msk.msra.mxu0 %vm231_vm1, %v141_v1  ;;  %1485 = vmatpush3.msk.msra.mxu1 %vm231_vm1, %v141_v1  ;;  %v116_v6 = vld [vmem:[#allocation2 + $0x10] sm:$0xff]  ;;  %v462_v8 = vld [vmem:[#allocation8] sm:$0xff]  ;;  %v467_v17 = vld [vmem:[#allocation8 + $0x28] sm:$0xff]  ;;  %s1761_s14 = scalar_lea.vmem %s968_s13, 3456  ;;  %p1766_p1 = scmp.lt.s32.totalorder %s968_s13, %s968_s13 }
  0x83   :  { %1130 = vmatmul.mubr.msk.f32.vlgmr.msra.gmra.mrb[0].mxu0 %vm149_vm2, %v114_v2  ;;  %1436 = vmatprep.subr.bf16.mxu1 %v1804_v3  ;;  %v1437_v10 = vpack.c.bf16 %v463_v9, %v462_v8  ;;  %v464_v11 = vld [vmem:[#allocation8 + $0x10] sm:$0xff]  ;;  %v465_v12 = vld [vmem:[#allocation8 + $0x18] sm:$0xff]  ;;  %v130_v14 = vld [vmem:[#allocation2 + $0x80] sm:$0xff]  ;;  %p1762_p0 = scmp.ne.s32.totalorder %s968_s13, %s1761_s14  ;;  %p1767_p2 = scmp.lt.s32.totalorder %s1761_s14, %s1761_s14 }
  0x84   :  { %1132 = vmatprep.mubr.msk.f32.mxu0 %vm1803_vm0, %v1802_v0  ;;  %1460 = vmatprep.subr.bf16.mxu0 %v1804_v3  ;;  %v117_v13 = vld [vmem:[#allocation2 + $0x18] sm:$0xff]  ;;  %v1440_v15 = vpack.c.bf16 %v465_v12, %v464_v11  ;;  %v118_v18 = vld [vmem:[#allocation2 + $0x20] sm:$0xff]  ;;  %v131_v19 = vld [vmem:[#allocation2 + $0x88] sm:$0xff] }
  0x85   :  { %1172 = vmatmul.mubr.msk.f32.vlgmr.msra.gmra.mrb[0].mxu1 %vm149_vm2, %v128_v5  ;;  %v466_v16 = vld [vmem:[#allocation8 + $0x20] sm:$0xff]  ;;  %v468_v21 = vld [vmem:[#allocation8 + $0x30] sm:$0xff]  ;;  %v469_v22 = vld [vmem:[#allocation8 + $0x38] sm:$0xff]  ;;  %p1768_p3 = por %p1767_p2, %p1766_p1 }
  0x86   :  { %1174 = vmatprep.mubr.msk.f32.mxu1 %vm1803_vm0, %v1802_v0  ;;  %1438 = vmatpush3.bf16.msra.mxu1 %v1437_v10  ;;  %v1443_v20 = vpack.c.bf16 %v467_v17, %v466_v16  ;;  %v119_v23 = vld [vmem:[#allocation2 + $0x28] sm:$0xff]  ;;  %v132_v24 = vld [vmem:[#allocation2 + $0x90] sm:$0xff]  ;;  %v1446_v25 = vpack.c.bf16 %v469_v22, %v468_v21  ;;  %v470_v26 = vld [vmem:[#allocation8 + $0x40] sm:$0xff] }
  0x87   :  { %1133 = vmatmul.mubr.msk.f32.gmra.mrb[2].mxu0 %vm149_vm2, %v115_v4  ;;  %1439 = vmatprep.subr.bf16.mxu1 %v1804_v3  ;;  %v471_v27 = vld [vmem:[#allocation8 + $0x48] sm:$0xff]  ;;  %v120_v28 = vld [vmem:[#allocation2 + $0x30] sm:$0xff]  ;;  %v133_v29 = vld [vmem:[#allocation2 + $0x98] sm:$0xff]  ;;  %p1769_p4 = pnand %p1768_p3, %p1762_p0 }
  0x88   :  { %1135 = vmatprep.mubr.msk.f32.mxu0 %vm1803_vm0, %v1802_v0  ;;  %v1449_v30 = vpack.c.bf16 %v471_v27, %v470_v26  ;;  %v472_v31 = vld [vmem:[#allocation8 + $0x50] sm:$0xff]  ;;  %v473_v32 = vld [vmem:[#allocation8 + $0x58] sm:$0xff]  ;;  %v134_v34 = vld [vmem:[#allocation2 + $0xa0] sm:$0xff] }
  0x89   :  { %1175 = vmatmul.mubr.msk.f32.gmra.mrb[2].mxu1 %vm149_vm2, %v129_v7  ;;  %v121_v33 = vld [vmem:[#allocation2 + $0x38] sm:$0xff]  ;;  %v1452_v35 = vpack.c.bf16 %v473_v32, %v472_v31  ;;  %v122_v36 = vld [vmem:[#allocation2 + $0x40] sm:$0xff]  ;;  %v135_v37 = vld [vmem:[#allocation2 + $0xa8] sm:$0xff] }
  0x8a   :  { %1177 = vmatprep.mubr.msk.f32.mxu1 %vm1803_vm0, %v1802_v0  ;;  %1441 = vmatpush3.bf16.msra.mxu1 %v1440_v15  ;;  %v123_v38 = vld [vmem:[#allocation2 + $0x48] sm:$0xff]  ;;  %v136_v39 = vld [vmem:[#allocation2 + $0xb0] sm:$0xff]  ;;  %v137_v41 = vld [vmem:[#allocation2 + $0xb8] sm:$0xff] }
  0x8b   :  { %1136 = vmatmul.mubr.msk.f32.gmra.mrb[4].mxu0 %vm149_vm2, %v116_v6  ;;  %1442 = vmatprep.subr.bf16.mxu1 %v1804_v3  ;;  %v124_v40 = vld [vmem:[#allocation2 + $0x50] sm:$0xff]  ;;  %v125_v42 = vld [vmem:[#allocation2 + $0x58] sm:$0xff]  ;;  %v138_v43 = vld [vmem:[#allocation2 + $0xc0] sm:$0xff] }
  0x8c   :  { %1138 = vmatprep.mubr.msk.f32.mxu0 %vm1803_vm0, %v1802_v0  ;;  %v126_v44 = vld [vmem:[#allocation2 + $0x60] sm:$0xff]  ;;  %v139_v45 = vld [vmem:[#allocation2 + $0xc8] sm:$0xff]  ;;  %v140_v47 = vld [vmem:[#allocation2 + $0xd0] sm:$0xff] }
  0x8d   :  { %1178 = vmatmul.mubr.msk.f32.gmra.mrb[4].mxu1 %vm149_vm2, %v130_v14  ;;  %v127_v46 = vld [vmem:[#allocation2 + $0x68] sm:$0xff]  ;;  %v474_v48 = vld [vmem:[#allocation8 + $0x60] sm:$0xff]  ;;  %v477_v52 = vld [vmem:[#allocation8 + $0x78] sm:$0xff] }
  0x8e   :  { %1180 = vmatprep.mubr.msk.f32.mxu1 %vm1803_vm0, %v1802_v0  ;;  %1444 = vmatpush3.bf16.msra.mxu1 %v1443_v20  ;;  %v475_v49 = vld [vmem:[#allocation8 + $0x68] sm:$0xff]  ;;  %v476_v51 = vld [vmem:[#allocation8 + $0x70] sm:$0xff]  ;;  %v715_v58 = vld [vmem:[#allocation11 + $0x18] sm:$0xff] }
  0x8f   :  { %1139 = vmatmul.mubr.msk.f32.gmra.mrb[6].mxu0 %vm149_vm2, %v117_v13  ;;  %1445 = vmatprep.subr.bf16.mxu1 %v1804_v3  ;;  %v1455_v50 = vpack.c.bf16 %v475_v49, %v474_v48  ;;  %v1458_v53 = vpack.c.bf16 %v477_v52, %v476_v51  ;;  %v712_v54 = vld [vmem:[#allocation11] sm:$0xff]  ;;  %v713_v55 = vld [vmem:[#allocation11 + $0x8] sm:$0xff]  ;;  %v714_v56 = vld [vmem:[#allocation11 + $0x10] sm:$0xff] }
  0x90   :  { %1141 = vmatprep.mubr.msk.f32.mxu0 %vm1803_vm0, %v1802_v0  ;;  %v1461_v57 = vpack.c.bf16 %v713_v55, %v712_v54  ;;  %v1464_v59 = vpack.c.bf16 %v715_v58, %v714_v56  ;;  %v716_v60 = vld [vmem:[#allocation11 + $0x20] sm:$0xff]  ;;  %v717_v61 = vld [vmem:[#allocation11 + $0x28] sm:$0xff]  ;;  %v2036_v63 = vld [vmem:[#allocation7] ss:$0 sm:$0xff] }
  0x91   :  { %1181 = vmatmul.mubr.msk.f32.gmra.mrb[6].mxu1 %vm149_vm2, %v131_v19  ;;  %v1467_v62 = vpack.c.bf16 %v717_v61, %v716_v60  ;;  %v718_v1 = vld [vmem:[#allocation11 + $0x30] sm:$0xff]  ;;  %v719_v2 = vld [vmem:[#allocation11 + $0x38] sm:$0xff]  ;;  %v720_v8 = vld [vmem:[#allocation11 + $0x40] sm:$0xff] }
  0x92   :  { %1183 = vmatprep.mubr.msk.f32.mxu1 %vm1803_vm0, %v1802_v0  ;;  %1447 = vmatpush3.bf16.msra.mxu1 %v1446_v25  ;;  %v1470_v7 = vpack.c.bf16 %v719_v2, %v718_v1  ;;  %v721_v9 = vld [vmem:[#allocation11 + $0x48] sm:$0xff]  ;;  %v722_v16 = vld [vmem:[#allocation11 + $0x50] sm:$0xff]  ;;  %v723_v17 = vld [vmem:[#allocation11 + $0x58] sm:$0xff] }
  0x93   :  { %1142 = vmatmul.mubr.msk.f32.gmra.mrb[8].mxu0 %vm149_vm2, %v118_v18  ;;  %1448 = vmatprep.subr.bf16.mxu1 %v1804_v3  ;;  %v1473_v15 = vpack.c.bf16 %v721_v9, %v720_v8 }
  0x94   :  { %1144 = vmatprep.mubr.msk.f32.mxu0 %vm1803_vm0, %v1802_v0  ;;  %1462 = vmatpush3.bf16.msra.mxu0 %v1461_v57 }
  0x95   :  { %1184 = vmatmul.mubr.msk.f32.gmra.mrb[8].mxu1 %vm149_vm2, %v132_v24  ;;  %1463 = vmatprep.subr.bf16.mxu0 %v1804_v3 }
  0x96   :  { %1186 = vmatprep.mubr.msk.f32.mxu1 %vm1803_vm0, %v1802_v0  ;;  %1450 = vmatpush3.bf16.msra.mxu1 %v1449_v30 }
  0x97   :  { %1145 = vmatmul.mubr.msk.f32.gmra.mrb[10].mxu0 %vm149_vm2, %v119_v23  ;;  %1451 = vmatprep.subr.bf16.mxu1 %v1804_v3  ;;  %v1476_v23 = vpack.c.bf16 %v723_v17, %v722_v16 }
  0x98   :  { %1147 = vmatprep.mubr.msk.f32.mxu0 %vm1803_vm0, %v1802_v0  ;;  %1465 = vmatpush3.bf16.msra.mxu0 %v1464_v59 }
  0x99   :  { %1187 = vmatmul.mubr.msk.f32.gmra.mrb[10].mxu1 %vm149_vm2, %v133_v29  ;;  %1466 = vmatprep.subr.bf16.mxu0 %v1804_v3 }
  0x9a   :  { %1189 = vmatprep.mubr.msk.f32.mxu1 %vm1803_vm0, %v1802_v0  ;;  %1453 = vmatpush3.bf16.msra.mxu1 %v1452_v35 }
  0x9b   :  { %1148 = vmatmul.mubr.msk.f32.gmra.mrb[12].mxu0 %vm149_vm2, %v120_v28  ;;  %1454 = vmatprep.subr.bf16.mxu1 %v1804_v3 }
  0x9c   :  { %1150 = vmatprep.mubr.msk.f32.mxu0 %vm1803_vm0, %v1802_v0  ;;  %1468 = vmatpush3.bf16.msra.mxu0 %v1467_v62 }
  0x9d   :  { %1190 = vmatmul.mubr.msk.f32.gmra.mrb[12].mxu1 %vm149_vm2, %v134_v34  ;;  %1469 = vmatprep.subr.bf16.mxu0 %v1804_v3 }
  0x9e   :  { %1192 = vmatprep.mubr.msk.f32.mxu1 %vm1803_vm0, %v1802_v0  ;;  %1456 = vmatpush3.bf16.msra.mxu1 %v1455_v50 }
  0x9f   :  { %1151 = vmatmul.mubr.msk.f32.gmra.mrb[14].mxu0 %vm149_vm2, %v121_v33  ;;  %1457 = vmatprep.subr.bf16.mxu1 %v1804_v3 }
  0xa0   :  { %1153 = vmatprep.mubr.msk.f32.mxu0 %vm1803_vm0, %v1802_v0  ;;  %1471 = vmatpush3.bf16.msra.mxu0 %v1470_v7 }
  0xa1   :  { %1193 = vmatmul.mubr.msk.f32.gmra.mrb[14].mxu1 %vm149_vm2, %v135_v37  ;;  %1472 = vmatprep.subr.bf16.mxu0 %v1804_v3 }
  0xa2   :  { %1195 = vmatprep.mubr.msk.f32.mxu1 %vm1803_vm0, %v1802_v0  ;;  %1459 = vmatpush3.bf16.msra.mxu1 %v1458_v53 }
  0xa3   :  { %1154 = vmatmul.mubr.msk.f32.gmra.mrb[16].mxu0 %vm149_vm2, %v122_v36 }
  0xa4   :  { %1156 = vmatprep.mubr.msk.f32.mxu0 %vm1803_vm0, %v1802_v0  ;;  %1474 = vmatpush3.bf16.msra.mxu0 %v1473_v15 }
  0xa5   :  { %1196 = vmatmul.mubr.msk.f32.gmra.mrb[16].mxu1 %vm149_vm2, %v136_v39  ;;  %1475 = vmatprep.subr.bf16.mxu0 %v1804_v3 }
  0xa6   :  { %1198 = vmatprep.mubr.msk.f32.mxu1 %vm1803_vm0, %v1802_v0 }
  0xa7   :  { %1157 = vmatmul.mubr.msk.f32.gmra.mrb[18].mxu0 %vm149_vm2, %v123_v38 }
  0xa8   :  { %1159 = vmatprep.mubr.msk.f32.mxu0 %vm1803_vm0, %v1802_v0  ;;  %1477 = vmatpush3.bf16.msra.mxu0 %v1476_v23 }
  0xa9   :  { %1199 = vmatmul.mubr.msk.f32.gmra.mrb[18].mxu1 %vm149_vm2, %v137_v41  ;;  %1478 = vmatprep.subr.bf16.mxu0 %v1804_v3 }
  0xaa   :  { %1201 = vmatprep.mubr.msk.f32.mxu1 %vm1803_vm0, %v1802_v0 }
  0xab   :  { %1160 = vmatmul.mubr.msk.f32.gmra.mrb[20].mxu0 %vm149_vm2, %v124_v40 }
  0xac   :  { %1162 = vmatprep.mubr.msk.f32.mxu0 %vm1803_vm0, %v1802_v0 }
  0xad   :  { %1202 = vmatmul.mubr.msk.f32.gmra.mrb[20].mxu1 %vm149_vm2, %v138_v43 }
  0xae   :  { %1204 = vmatprep.mubr.msk.f32.mxu1 %vm1803_vm0, %v1802_v0 }
  0xaf   :  { %1163 = vmatmul.mubr.msk.f32.gmra.mrb[22].mxu0 %vm149_vm2, %v125_v42 }
  0xb0   :  { %1165 = vmatprep.mubr.msk.f32.mxu0 %vm1803_vm0, %v1802_v0 }
  0xb1   :  { %1205 = vmatmul.mubr.msk.f32.gmra.mrb[22].mxu1 %vm149_vm2, %v139_v45 }
  0xb2   :  { %1207 = vmatprep.mubr.msk.f32.mxu1 %vm1803_vm0, %v1802_v0 }
  0xb3   :  { %1166 = vmatmul.mubr.msk.f32.gmra.mrb[24].mxu0 %vm149_vm2, %v126_v44 }
  0xb4   :  { %1168 = vmatprep.mubr.msk.f32.mxu0 %vm1803_vm0, %v1802_v0 }
  0xb5   :  { %1208 = vmatmul.mubr.msk.f32.gmra.mrb[24].mxu1 %vm149_vm2, %v140_v47 }
  0xb6   :  { %1242 = vmatprep.mubr.msk.f32.mxu1 %vm1803_vm0, %v1802_v0 }
  0xb7   :  { %1169 = vmatmul.mubr.msk.f32.gmra.mrb[26].mxu0 %vm149_vm2, %v127_v46 }
  0xb8   :  { %1355 = vmatprep.mubr.msk.f32.mxu0 %vm1803_vm0, %v1802_v0 }
 0x156   :  { %v301_v4 = vpop.f32.mrb[0].mxu0 }
 0x157   :  { %v302_v5 = vadd.f32 %v2036_v63, %v301_v4  ;;  %v1131_v6 = vpop.f32.mrb[1].mxu0 }
 0x158   :  { %v2041_v11 = vpop.f32.mrb[0].mxu1 }
 0x159   :  { %1499 = vtanh.f32 %v302_v5  ;;  %v1173_v14 = vpop.f32.mrb[1].mxu1 }
 0x15a   :  { %v306_v10 = vpop.f32.mrb[2].mxu0 }
 0x15b   :  { %v307_v12 = vadd.f32 %v2036_v63, %v306_v10  ;;  %v1134_v13 = vpop.f32.mrb[3].mxu0 }
 0x15c   :  { %v2045_v19 = vpop.f32.mrb[2].mxu1 }
 0x15d   :  { %1501 = vtanh.f32 %v307_v12  ;;  %v1176_v22 = vpop.f32.mrb[3].mxu1 }
 0x15e   :  { %v311_v18 = vpop.f32.mrb[4].mxu0 }
 0x15f   :  { %v312_v20 = vadd.f32 %v2036_v63, %v311_v18  ;;  %v1137_v21 = vpop.f32.mrb[5].mxu0 }
 0x160   :  { %v381_v25 = vpop.f32.mrb[4].mxu1 }
 0x161   :  { %1503 = vtanh.f32 %v312_v20  ;;  %v2051_v29 = vadd.f32 %v2036_v63, %v381_v25  ;;  %v1179_v30 = vpop.f32.mrb[5].mxu1 }
 0x162   :  { %v316_v24 = vpop.f32.mrb[6].mxu0 }
 0x163   :  { %v1500_v26 = vpop.eup %1499  ;;  %v317_v27 = vadd.f32 %v2036_v63, %v316_v24  ;;  %v1140_v28 = vpop.f32.mrb[7].mxu0 }
 0x164   :  { %1243 = vmatmul.mubr.f32.vlgmr.msra.gmra.mrb[26].mxu1 %v1500_v26  ;;  %v386_v32 = vpop.f32.mrb[6].mxu1 }
 0x165   :  { %1505 = vtanh.f32 %v317_v27  ;;  %1245 = vmatprep.mubr.msk.f32.mxu1 %vm1803_vm0, %v1802_v0  ;;  %v2058_v36 = vadd.f32 %v2036_v63, %v386_v32  ;;  %v1182_v37 = vpop.f32.mrb[7].mxu1 }
 0x166   :  { %v321_v31 = vpop.f32.mrb[8].mxu0 }
 0x167   :  { %v1502_v33 = vpop.eup %1501  ;;  %v322_v34 = vadd.f32 %v2036_v63, %v321_v31  ;;  %v1143_v35 = vpop.f32.mrb[9].mxu0 }
 0x168   :  { %1246 = vmatmul.mubr.f32.gmra.mrb[28].mxu1 %v1502_v33  ;;  %v391_v39 = vpop.f32.mrb[8].mxu1 }
 0x169   :  { %1507 = vtanh.f32 %v322_v34  ;;  %1248 = vmatprep.mubr.msk.f32.mxu1 %vm1803_vm0, %v1802_v0  ;;  %v2064_v43 = vadd.f32 %v2036_v63, %v391_v39  ;;  %v1185_v44 = vpop.f32.mrb[9].mxu1 }
 0x16a   :  { %v326_v38 = vpop.f32.mrb[10].mxu0 }
 0x16b   :  { %v1504_v40 = vpop.eup %1503  ;;  %v327_v41 = vadd.f32 %v2036_v63, %v326_v38  ;;  %v1146_v42 = vpop.f32.mrb[11].mxu0 }
 0x16c   :  { %1249 = vmatmul.mubr.f32.gmra.mrb[30].mxu1 %v1504_v40  ;;  %v396_v46 = vpop.f32.mrb[10].mxu1  ;;  %v372_v42 = vadd.f32 %v2036_v63, %v2041_v11 }
 0x16d   :  { %1509 = vtanh.f32 %v327_v41  ;;  %1251 = vmatprep.mubr.msk.f32.mxu1 %vm1803_vm0, %v1802_v0  ;;  %v2070_v50 = vadd.f32 %v2036_v63, %v396_v46  ;;  %v1188_v51 = vpop.f32.mrb[11].mxu1 }
 0x16e   :  { %v331_v45 = vpop.f32.mrb[12].mxu0 }
 0x16f   :  { %v1506_v47 = vpop.eup %1505  ;;  %v332_v48 = vadd.f32 %v2036_v63, %v331_v45  ;;  %v1149_v49 = vpop.f32.mrb[13].mxu0 }
 0x170   :  { %1252 = vmatmul.mubr.f32.gmra.mrb[32].mxu1 %v1506_v47  ;;  %v401_v53 = vpop.f32.mrb[12].mxu1  ;;  %v377_v47 = vadd.f32 %v2036_v63, %v2045_v19 }
 0x171   :  { %1511 = vtanh.f32 %v332_v48  ;;  %1254 = vmatprep.mubr.msk.f32.mxu1 %vm1803_vm0, %v1802_v0  ;;  %v2076_v57 = vadd.f32 %v2036_v63, %v401_v53  ;;  %v1191_v58 = vpop.f32.mrb[13].mxu1  ;;  %v724_v53 = vld [vmem:[#allocation11 + $0x60] sm:$0xff] }
 0x172   :  { %v336_v52 = vpop.f32.mrb[14].mxu0  ;;  %v727_v58 = vld [vmem:[#allocation11 + $0x78] sm:$0xff] }
 0x173   :  { %v1508_v54 = vpop.eup %1507  ;;  %v337_v55 = vadd.f32 %v2036_v63, %v336_v52  ;;  %v1152_v56 = vpop.f32.mrb[15].mxu0 }
 0x174   :  { %1255 = vmatmul.mubr.f32.gmra.mrb[34].mxu1 %v1508_v54  ;;  %v406_v60 = vpop.f32.mrb[14].mxu1  ;;  %v725_v54 = vld [vmem:[#allocation11 + $0x68] sm:$0xff] }
 0x175   :  { %1513 = vtanh.f32 %v337_v55  ;;  %1257 = vmatprep.mubr.msk.f32.mxu1 %vm1803_vm0, %v1802_v0  ;;  %v2082_v2 = vadd.f32 %v2036_v63, %v406_v60  ;;  %v1194_v4 = vpop.f32.mrb[15].mxu1  ;;  %v1479_v55 = vpack.c.bf16 %v725_v54, %v724_v53 }
 0x176   :  { %v341_v59 = vpop.f32.mrb[16].mxu0 }
 0x177   :  { %v1510_v61 = vpop.eup %1509  ;;  %v342_v62 = vadd.f32 %v2036_v63, %v341_v59  ;;  %v1155_v1 = vpop.f32.mrb[17].mxu0  ;;  %1480 = vmatpush3.bf16.msra.mxu0 %v1479_v55 }
 0x178   :  { %1258 = vmatmul.mubr.f32.gmra.mrb[36].mxu1 %v1510_v61  ;;  %v411_v6 = vpop.f32.mrb[16].mxu1  ;;  %1481 = vmatprep.subr.bf16.mxu0 %v1804_v3  ;;  %v2159_v3 = vld [vmem:[#allocation10] ss:$0 sm:$0xff] }
 0x179   :  { %1515 = vtanh.f32 %v342_v62  ;;  %1260 = vmatprep.mubr.msk.f32.mxu1 %vm1803_vm0, %v1802_v0  ;;  %v2088_v10 = vadd.f32 %v2036_v63, %v411_v6  ;;  %v1197_v12 = vpop.f32.mrb[17].mxu1 }
 0x17a   :  { %v346_v5 = vpop.f32.mrb[18].mxu0 }
 0x17b   :  { %v1512_v7 = vpop.eup %1511  ;;  %v347_v8 = vadd.f32 %v2036_v63, %v346_v5  ;;  %v1158_v9 = vpop.f32.mrb[19].mxu0 }
 0x17c   :  { %1261 = vmatmul.mubr.f32.gmra.mrb[38].mxu1 %v1512_v7  ;;  %v416_v14 = vpop.f32.mrb[18].mxu1 }
 0x17d   :  { %1517 = vtanh.f32 %v347_v8  ;;  %1263 = vmatprep.mubr.msk.f32.mxu1 %vm1803_vm0, %v1802_v0  ;;  %v2094_v18 = vadd.f32 %v2036_v63, %v416_v14  ;;  %v1200_v20 = vpop.f32.mrb[19].mxu1 }
 0x17e   :  { %v351_v13 = vpop.f32.mrb[20].mxu0 }
 0x17f   :  { %v1514_v15 = vpop.eup %1513  ;;  %v352_v16 = vadd.f32 %v2036_v63, %v351_v13  ;;  %v1161_v17 = vpop.f32.mrb[21].mxu0 }
 0x180   :  { %1264 = vmatmul.mubr.f32.gmra.mrb[40].mxu1 %v1514_v15  ;;  %v421_v22 = vpop.f32.mrb[20].mxu1 }
 0x181   :  { %1519 = vtanh.f32 %v352_v16  ;;  %1266 = vmatprep.mubr.msk.f32.mxu1 %vm1803_vm0, %v1802_v0  ;;  %v2100_v26 = vadd.f32 %v2036_v63, %v421_v22  ;;  %v1203_v27 = vpop.f32.mrb[21].mxu1 }
 0x182   :  { %v356_v21 = vpop.f32.mrb[22].mxu0 }
 0x183   :  { %v1516_v23 = vpop.eup %1515  ;;  %v357_v24 = vadd.f32 %v2036_v63, %v356_v21  ;;  %v1164_v25 = vpop.f32.mrb[23].mxu0 }
 0x184   :  { %1267 = vmatmul.mubr.f32.gmra.mrb[42].mxu1 %v1516_v23  ;;  %v426_v30 = vpop.f32.mrb[22].mxu1 }
 0x185   :  { %1521 = vtanh.f32 %v357_v24  ;;  %1269 = vmatprep.mubr.msk.f32.mxu1 %vm1803_vm0, %v1802_v0  ;;  %v2106_v34 = vadd.f32 %v2036_v63, %v426_v30  ;;  %v1206_v35 = vpop.f32.mrb[23].mxu1 }
 0x186   :  { %v361_v28 = vpop.f32.mrb[24].mxu0 }
 0x187   :  { %v1518_v31 = vpop.eup %1517  ;;  %v362_v32 = vadd.f32 %v2036_v63, %v361_v28  ;;  %v1167_v33 = vpop.f32.mrb[25].mxu0 }
 0x188   :  { %1270 = vmatmul.mubr.f32.gmra.mrb[44].mxu1 %v1518_v31  ;;  %v431_v38 = vpop.f32.mrb[24].mxu1 }
 0x189   :  { %1523 = vtanh.f32 %v362_v32  ;;  %1272 = vmatprep.mubr.msk.f32.mxu1 %vm1803_vm0, %v1802_v0  ;;  %v432_v44 = vadd.f32 %v2036_v63, %v431_v38  ;;  %v1209_v45 = vpop.f32.mrb[25].mxu1 }
 0x18a   :  { %v366_v37 = vpop.f32.mrb[26].mxu0 }
 0x18b   :  { %v1520_v39 = vpop.eup %1519  ;;  %v367_v40 = vadd.f32 %v2036_v63, %v366_v37  ;;  %v1170_v41 = vpop.f32.mrb[27].mxu0 }
 0x18c   :  { %1273 = vmatmul.mubr.f32.gmra.mrb[46].mxu1 %v1520_v39 }
 0x18d   :  { %1525 = vtanh.f32 %v367_v40  ;;  %1275 = vmatprep.mubr.msk.f32.mxu1 %vm1803_vm0, %v1802_v0 }
 0x18e   :  { %1527 = vtanh.f32 %v372_v42 }
 0x18f   :  { %v1522_v46 = vpop.eup %1521  ;;  %1529 = vtanh.f32 %v377_v47 }
 0x190   :  { %1276 = vmatmul.mubr.f32.gmra.mrb[48].mxu1 %v1522_v46  ;;  %1531 = vtanh.f32 %v2051_v29 }
 0x191   :  { %1278 = vmatprep.mubr.msk.f32.mxu1 %vm1803_vm0, %v1802_v0  ;;  %1533 = vtanh.f32 %v2058_v36 }
 0x192   :  { %1535 = vtanh.f32 %v2064_v43 }
 0x193   :  { %v1524_v48 = vpop.eup %1523  ;;  %1537 = vtanh.f32 %v2070_v50 }
 0x194   :  { %1279 = vmatmul.mubr.f32.gmra.mrb[50].mxu1 %v1524_v48  ;;  %1539 = vtanh.f32 %v2076_v57  ;;  %v726_v57 = vld [vmem:[#allocation11 + $0x70] sm:$0xff] }
 0x195   :  { %1281 = vmatprep.mubr.msk.f32.mxu1 %vm1803_vm0, %v1802_v0  ;;  %1541 = vtanh.f32 %v2082_v2  ;;  %v1482_v59 = vpack.c.bf16 %v727_v58, %v726_v57 }
 0x196   :  { %1543 = vtanh.f32 %v2088_v10 }
 0x197   :  { %v1526_v11 = vpop.eup %1525  ;;  %1545 = vtanh.f32 %v2094_v18  ;;  %1483 = vmatpush3.bf16.msra.mxu0 %v1482_v59 }
 0x198   :  { %1282 = vmatmul.mubr.f32.gmra.mrb[52].mxu1 %v1526_v11  ;;  %v1528_v49 = vpop.eup %1527  ;;  %1547 = vtanh.f32 %v2100_v26 }
 0x199   :  { %1284 = vmatprep.mubr.msk.f32.mxu1 %vm1803_vm0, %v1802_v0  ;;  %v1530_v63 = vpop.eup %1529  ;;  %1549 = vtanh.f32 %v2106_v34 }
 0x19a   :  { %v1532_v19 = vpop.eup %1531  ;;  %1551 = vtanh.f32 %v432_v44 }
 0x19b   :  { %v1534_v29 = vpop.eup %1533 }
 0x19c   :  { %1285 = vmatmul.mubr.f32.gmra.mrb[54].mxu1 %v1528_v49  ;;  %v1536_v36 = vpop.eup %1535 }
 0x19d   :  { %1287 = vmatprep.mubr.msk.f32.mxu1 %vm1803_vm0, %v1802_v0  ;;  %v1538_v43 = vpop.eup %1537 }
 0x19e   :  { %v1540_v50 = vpop.eup %1539 }
 0x19f   :  { %v1542_v51 = vpop.eup %1541 }
 0x1a0   :  { %1288 = vmatmul.mubr.f32.gmra.mrb[56].mxu1 %v1530_v63  ;;  %v1544_v52 = vpop.eup %1543 }
 0x1a1   :  { %1290 = vmatprep.mubr.msk.f32.mxu1 %vm1803_vm0, %v1802_v0  ;;  %v1546_v56 = vpop.eup %1545 }
 0x1a2   :  { %v1548_v60 = vpop.eup %1547 }
 0x1a3   :  { %v1550_v61 = vpop.eup %1549 }
 0x1a4   :  { %1291 = vmatmul.mubr.f32.gmra.mrb[58].mxu1 %v1532_v19  ;;  %v1552_v62 = vpop.eup %1551 }
 0x1a5   :  { %1293 = vmatprep.mubr.msk.f32.mxu1 %vm1803_vm0, %v1802_v0 }
 0x1a8   :  { %1294 = vmatmul.mubr.f32.gmra.mrb[60].mxu1 %v1534_v29 }
 0x1a9   :  { %1296 = vmatprep.mubr.msk.f32.mxu1 %vm1803_vm0, %v1802_v0 }
 0x1ac   :  { %1297 = vmatmul.mubr.f32.gmra.mrb[62].mxu1 %v1536_v36 }
 0x1ad   :  { %1299 = vmatprep.mubr.msk.f32.mxu1 %vm1803_vm0, %v1802_v0 }
 0x1b0   :  { %1300 = vmatmul.mubr.f32.gmra.mrb[64].mxu1 %v1538_v43 }
 0x1b1   :  { %1302 = vmatprep.mubr.msk.f32.mxu1 %vm1803_vm0, %v1802_v0 }
 0x1b4   :  { %1303 = vmatmul.mubr.f32.gmra.mrb[66].mxu1 %v1540_v50 }
 0x1b5   :  { %1305 = vmatprep.mubr.msk.f32.mxu1 %vm1803_vm0, %v1802_v0 }
 0x1b8   :  { %1306 = vmatmul.mubr.f32.gmra.mrb[68].mxu1 %v1542_v51 }
 0x1b9   :  { %1308 = vmatprep.mubr.msk.f32.mxu1 %vm1803_vm0, %v1802_v0 }
 0x1bc   :  { %1309 = vmatmul.mubr.f32.gmra.mrb[70].mxu1 %v1544_v52 }
 0x1bd   :  { %1311 = vmatprep.mubr.msk.f32.mxu1 %vm1803_vm0, %v1802_v0 }
 0x1c0   :  { %1312 = vmatmul.mubr.f32.gmra.mrb[72].mxu1 %v1546_v56 }
 0x1c1   :  { %1314 = vmatprep.mubr.msk.f32.mxu1 %vm1803_vm0, %v1802_v0 }
 0x1c4   :  { %1315 = vmatmul.mubr.f32.gmra.mrb[74].mxu1 %v1548_v60 }
 0x1c5   :  { %1317 = vmatprep.mubr.msk.f32.mxu1 %vm1803_vm0, %v1802_v0 }
 0x1c8   :  { %1318 = vmatmul.mubr.f32.gmra.mrb[76].mxu1 %v1550_v61 }
 0x1c9   :  { %1320 = vmatprep.mubr.msk.f32.mxu1 %vm1803_vm0, %v1802_v0 }
 0x1cc   :  { %1321 = vmatmul.mubr.f32.gmra.mrb[78].mxu1 %v1552_v62 }
 0x237   :  { %v551_v1 = vpop.f32.mrb[26].mxu1 }
 0x238   :  { %v552_v2 = vadd.f32 %v2159_v3, %v551_v1  ;;  %v1244_v4 = vpop.f32.mrb[27].mxu1 }
 0x23a   :  { %1553 = vtanh.f32 %v552_v2 }
 0x23b   :  { %v556_v5 = vpop.f32.mrb[28].mxu1 }
 0x23c   :  { %v557_v6 = vadd.f32 %v2159_v3, %v556_v5  ;;  %v1247_v7 = vpop.f32.mrb[29].mxu1 }
 0x23e   :  { %1555 = vtanh.f32 %v557_v6 }
 0x23f   :  { %v561_v8 = vpop.f32.mrb[30].mxu1 }
 0x240   :  { %v562_v9 = vadd.f32 %v2159_v3, %v561_v8  ;;  %v1250_v10 = vpop.f32.mrb[31].mxu1 }
 0x242   :  { %1557 = vtanh.f32 %v562_v9 }
 0x243   :  { %v566_v12 = vpop.f32.mrb[32].mxu1 }
 0x244   :  { %v1554_v13 = vpop.eup %1553  ;;  %v567_v14 = vadd.f32 %v2159_v3, %v566_v12  ;;  %v1253_v15 = vpop.f32.mrb[33].mxu1 }
 0x245   :  { %1356 = vmatmul.mubr.f32.vlgmr.msra.gmra.mrb[28].mxu0 %v1554_v13 }
 0x246   :  { %1559 = vtanh.f32 %v567_v14  ;;  %1358 = vmatprep.mubr.msk.f32.mxu0 %vm1803_vm0, %v1802_v0 }
 0x247   :  { %v571_v16 = vpop.f32.mrb[34].mxu1 }
 0x248   :  { %v1556_v17 = vpop.eup %1555  ;;  %v572_v18 = vadd.f32 %v2159_v3, %v571_v16  ;;  %v1256_v20 = vpop.f32.mrb[35].mxu1 }
 0x249   :  { %1359 = vmatmul.mubr.f32.gmra.mrb[30].mxu0 %v1556_v17 }
 0x24a   :  { %1561 = vtanh.f32 %v572_v18  ;;  %1361 = vmatprep.mubr.msk.f32.mxu0 %vm1803_vm0, %v1802_v0 }
 0x24b   :  { %v576_v21 = vpop.f32.mrb[36].mxu1 }
 0x24c   :  { %v1558_v22 = vpop.eup %1557  ;;  %v577_v23 = vadd.f32 %v2159_v3, %v576_v21  ;;  %v1259_v24 = vpop.f32.mrb[37].mxu1 }
 0x24d   :  { %1362 = vmatmul.mubr.f32.gmra.mrb[32].mxu0 %v1558_v22 }
 0x24e   :  { %1563 = vtanh.f32 %v577_v23  ;;  %1364 = vmatprep.mubr.msk.f32.mxu0 %vm1803_vm0, %v1802_v0 }
 0x24f   :  { %v581_v25 = vpop.f32.mrb[38].mxu1 }
 0x250   :  { %v1560_v26 = vpop.eup %1559  ;;  %v582_v27 = vadd.f32 %v2159_v3, %v581_v25  ;;  %v1262_v28 = vpop.f32.mrb[39].mxu1 }
 0x251   :  { %1365 = vmatmul.mubr.f32.gmra.mrb[34].mxu0 %v1560_v26 }
 0x252   :  { %1565 = vtanh.f32 %v582_v27  ;;  %1367 = vmatprep.mubr.msk.f32.mxu0 %vm1803_vm0, %v1802_v0 }
 0x253   :  { %v586_v30 = vpop.f32.mrb[40].mxu1 }
 0x254   :  { %v1562_v31 = vpop.eup %1561  ;;  %v587_v32 = vadd.f32 %v2159_v3, %v586_v30  ;;  %v1265_v33 = vpop.f32.mrb[41].mxu1 }
 0x255   :  { %1368 = vmatmul.mubr.f32.gmra.mrb[36].mxu0 %v1562_v31 }
 0x256   :  { %1567 = vtanh.f32 %v587_v32  ;;  %1370 = vmatprep.mubr.msk.f32.mxu0 %vm1803_vm0, %v1802_v0 }
 0x257   :  { %v591_v34 = vpop.f32.mrb[42].mxu1 }
 0x258   :  { %v1564_v35 = vpop.eup %1563  ;;  %v592_v37 = vadd.f32 %v2159_v3, %v591_v34  ;;  %v1268_v38 = vpop.f32.mrb[43].mxu1 }
 0x259   :  { %1371 = vmatmul.mubr.f32.gmra.mrb[38].mxu0 %v1564_v35 }
 0x25a   :  { %1569 = vtanh.f32 %v592_v37  ;;  %1373 = vmatprep.mubr.msk.f32.mxu0 %vm1803_vm0, %v1802_v0 }
 0x25b   :  { %v596_v39 = vpop.f32.mrb[44].mxu1 }
 0x25c   :  { %v1566_v40 = vpop.eup %1565  ;;  %v597_v41 = vadd.f32 %v2159_v3, %v596_v39  ;;  %v1271_v42 = vpop.f32.mrb[45].mxu1 }
 0x25d   :  { %1374 = vmatmul.mubr.f32.gmra.mrb[40].mxu0 %v1566_v40 }
 0x25e   :  { %1571 = vtanh.f32 %v597_v41  ;;  %1376 = vmatprep.mubr.msk.f32.mxu0 %vm1803_vm0, %v1802_v0 }
 0x25f   :  { %v601_v44 = vpop.f32.mrb[46].mxu1 }
 0x260   :  { %v1568_v45 = vpop.eup %1567  ;;  %v602_v46 = vadd.f32 %v2159_v3, %v601_v44  ;;  %v1274_v47 = vpop.f32.mrb[47].mxu1 }
 0x261   :  { %1377 = vmatmul.mubr.f32.gmra.mrb[42].mxu0 %v1568_v45 }
 0x262   :  { %1573 = vtanh.f32 %v602_v46  ;;  %1379 = vmatprep.mubr.msk.f32.mxu0 %vm1803_vm0, %v1802_v0 }
 0x263   :  { %v606_v48 = vpop.f32.mrb[48].mxu1 }
 0x264   :  { %v1570_v11 = vpop.eup %1569  ;;  %v607_v49 = vadd.f32 %v2159_v3, %v606_v48  ;;  %v1277_v63 = vpop.f32.mrb[49].mxu1 }
 0x265   :  { %1380 = vmatmul.mubr.f32.gmra.mrb[44].mxu0 %v1570_v11 }
 0x266   :  { %1575 = vtanh.f32 %v607_v49  ;;  %1382 = vmatprep.mubr.msk.f32.mxu0 %vm1803_vm0, %v1802_v0 }
 0x267   :  { %v611_v19 = vpop.f32.mrb[50].mxu1 }
 0x268   :  { %v1572_v29 = vpop.eup %1571  ;;  %v612_v36 = vadd.f32 %v2159_v3, %v611_v19  ;;  %v1280_v43 = vpop.f32.mrb[51].mxu1 }
 0x269   :  { %1383 = vmatmul.mubr.f32.gmra.mrb[46].mxu0 %v1572_v29  ;;  %v2240_v29 = vld [vmem:[#allocation13] ss:$0 sm:$0xff] }
 0x26a   :  { %1577 = vtanh.f32 %v612_v36  ;;  %1385 = vmatprep.mubr.msk.f32.mxu0 %vm1803_vm0, %v1802_v0 }
 0x26b   :  { %v616_v50 = vpop.f32.mrb[52].mxu1 }
 0x26c   :  { %v1574_v51 = vpop.eup %1573  ;;  %v617_v52 = vadd.f32 %v2159_v3, %v616_v50  ;;  %v1283_v53 = vpop.f32.mrb[53].mxu1 }
 0x26d   :  { %1386 = vmatmul.mubr.f32.gmra.mrb[48].mxu0 %v1574_v51 }
 0x26e   :  { %1579 = vtanh.f32 %v617_v52  ;;  %1388 = vmatprep.mubr.msk.f32.mxu0 %vm1803_vm0, %v1802_v0 }
 0x26f   :  { %v621_v54 = vpop.f32.mrb[54].mxu1 }
 0x270   :  { %v1576_v55 = vpop.eup %1575  ;;  %v622_v56 = vadd.f32 %v2159_v3, %v621_v54  ;;  %v1286_v57 = vpop.f32.mrb[55].mxu1 }
 0x271   :  { %1389 = vmatmul.mubr.f32.gmra.mrb[50].mxu0 %v1576_v55 }
 0x272   :  { %1581 = vtanh.f32 %v622_v56  ;;  %1391 = vmatprep.mubr.msk.f32.mxu0 %vm1803_vm0, %v1802_v0 }
 0x273   :  { %v626_v58 = vpop.f32.mrb[56].mxu1 }
 0x274   :  { %v1578_v59 = vpop.eup %1577  ;;  %v627_v60 = vadd.f32 %v2159_v3, %v626_v58  ;;  %v1289_v61 = vpop.f32.mrb[57].mxu1 }
 0x275   :  { %1392 = vmatmul.mubr.f32.gmra.mrb[52].mxu0 %v1578_v59 }
 0x276   :  { %1583 = vtanh.f32 %v627_v60  ;;  %1394 = vmatprep.mubr.msk.f32.mxu0 %vm1803_vm0, %v1802_v0 }
 0x277   :  { %v631_v62 = vpop.f32.mrb[58].mxu1 }
 0x278   :  { %v1580_v1 = vpop.eup %1579  ;;  %v632_v2 = vadd.f32 %v2159_v3, %v631_v62  ;;  %v1292_v4 = vpop.f32.mrb[59].mxu1 }
 0x279   :  { %1395 = vmatmul.mubr.f32.gmra.mrb[54].mxu0 %v1580_v1 }
 0x27a   :  { %1585 = vtanh.f32 %v632_v2  ;;  %1397 = vmatprep.mubr.msk.f32.mxu0 %vm1803_vm0, %v1802_v0 }
 0x27b   :  { %v636_v5 = vpop.f32.mrb[60].mxu1 }
 0x27c   :  { %v1582_v6 = vpop.eup %1581  ;;  %v637_v7 = vadd.f32 %v2159_v3, %v636_v5  ;;  %v1295_v8 = vpop.f32.mrb[61].mxu1 }
 0x27d   :  { %1398 = vmatmul.mubr.f32.gmra.mrb[56].mxu0 %v1582_v6 }
 0x27e   :  { %1587 = vtanh.f32 %v637_v7  ;;  %1400 = vmatprep.mubr.msk.f32.mxu0 %vm1803_vm0, %v1802_v0 }
 0x27f   :  { %v641_v9 = vpop.f32.mrb[62].mxu1 }
 0x280   :  { %v1584_v10 = vpop.eup %1583  ;;  %v642_v12 = vadd.f32 %v2159_v3, %v641_v9  ;;  %v1298_v13 = vpop.f32.mrb[63].mxu1 }
 0x281   :  { %1401 = vmatmul.mubr.f32.gmra.mrb[58].mxu0 %v1584_v10 }
 0x282   :  { %1589 = vtanh.f32 %v642_v12  ;;  %1403 = vmatprep.mubr.msk.f32.mxu0 %vm1803_vm0, %v1802_v0 }
 0x283   :  { %v646_v14 = vpop.f32.mrb[64].mxu1 }
 0x284   :  { %v1586_v15 = vpop.eup %1585  ;;  %v647_v16 = vadd.f32 %v2159_v3, %v646_v14  ;;  %v1301_v17 = vpop.f32.mrb[65].mxu1 }
 0x285   :  { %1404 = vmatmul.mubr.f32.gmra.mrb[60].mxu0 %v1586_v15 }
 0x286   :  { %1591 = vtanh.f32 %v647_v16  ;;  %1406 = vmatprep.mubr.msk.f32.mxu0 %vm1803_vm0, %v1802_v0 }
 0x287   :  { %v651_v18 = vpop.f32.mrb[66].mxu1 }
 0x288   :  { %v1588_v20 = vpop.eup %1587  ;;  %v652_v21 = vadd.f32 %v2159_v3, %v651_v18  ;;  %v1304_v22 = vpop.f32.mrb[67].mxu1 }
 0x289   :  { %1407 = vmatmul.mubr.f32.gmra.mrb[62].mxu0 %v1588_v20 }
 0x28a   :  { %1593 = vtanh.f32 %v652_v21  ;;  %1409 = vmatprep.mubr.msk.f32.mxu0 %vm1803_vm0, %v1802_v0 }
 0x28b   :  { %v656_v23 = vpop.f32.mrb[68].mxu1 }
 0x28c   :  { %v1590_v24 = vpop.eup %1589  ;;  %v657_v25 = vadd.f32 %v2159_v3, %v656_v23  ;;  %v1307_v26 = vpop.f32.mrb[69].mxu1 }
 0x28d   :  { %1410 = vmatmul.mubr.f32.gmra.mrb[64].mxu0 %v1590_v24 }
 0x28e   :  { %1595 = vtanh.f32 %v657_v25  ;;  %1412 = vmatprep.mubr.msk.f32.mxu0 %vm1803_vm0, %v1802_v0 }
 0x28f   :  { %v661_v27 = vpop.f32.mrb[70].mxu1 }
 0x290   :  { %v1592_v28 = vpop.eup %1591  ;;  %v662_v30 = vadd.f32 %v2159_v3, %v661_v27  ;;  %v1310_v31 = vpop.f32.mrb[71].mxu1 }
 0x291   :  { %1413 = vmatmul.mubr.f32.gmra.mrb[66].mxu0 %v1592_v28 }
 0x292   :  { %1597 = vtanh.f32 %v662_v30  ;;  %1415 = vmatprep.mubr.msk.f32.mxu0 %vm1803_vm0, %v1802_v0 }
 0x293   :  { %v666_v32 = vpop.f32.mrb[72].mxu1 }
 0x294   :  { %v1594_v33 = vpop.eup %1593  ;;  %v667_v34 = vadd.f32 %v2159_v3, %v666_v32  ;;  %v1313_v35 = vpop.f32.mrb[73].mxu1 }
 0x295   :  { %1416 = vmatmul.mubr.f32.gmra.mrb[68].mxu0 %v1594_v33 }
 0x296   :  { %1599 = vtanh.f32 %v667_v34  ;;  %1418 = vmatprep.mubr.msk.f32.mxu0 %vm1803_vm0, %v1802_v0 }
 0x297   :  { %v671_v37 = vpop.f32.mrb[74].mxu1 }
 0x298   :  { %v1596_v38 = vpop.eup %1595  ;;  %v672_v39 = vadd.f32 %v2159_v3, %v671_v37  ;;  %v1316_v40 = vpop.f32.mrb[75].mxu1 }
 0x299   :  { %1419 = vmatmul.mubr.f32.gmra.mrb[70].mxu0 %v1596_v38 }
 0x29a   :  { %1601 = vtanh.f32 %v672_v39  ;;  %1421 = vmatprep.mubr.msk.f32.mxu0 %vm1803_vm0, %v1802_v0 }
 0x29b   :  { %v676_v41 = vpop.f32.mrb[76].mxu1 }
 0x29c   :  { %v1598_v42 = vpop.eup %1597  ;;  %v677_v44 = vadd.f32 %v2159_v3, %v676_v41  ;;  %v1319_v45 = vpop.f32.mrb[77].mxu1 }
 0x29d   :  { %1422 = vmatmul.mubr.f32.gmra.mrb[72].mxu0 %v1598_v42 }
 0x29e   :  { %1603 = vtanh.f32 %v677_v44  ;;  %1424 = vmatprep.mubr.msk.f32.mxu0 %vm1803_vm0, %v1802_v0 }
 0x29f   :  { %v681_v46 = vpop.f32.mrb[78].mxu1 }
 0x2a0   :  { %v1600_v47 = vpop.eup %1599  ;;  %v682_v48 = vadd.f32 %v2159_v3, %v681_v46  ;;  %v1322_v11 = vpop.f32.mrb[79].mxu1 }
 0x2a1   :  { %1425 = vmatmul.mubr.f32.gmra.mrb[74].mxu0 %v1600_v47 }
 0x2a2   :  { %1605 = vtanh.f32 %v682_v48  ;;  %1427 = vmatprep.mubr.msk.f32.mxu0 %vm1803_vm0, %v1802_v0 }
 0x2a4   :  { %v1602_v49 = vpop.eup %1601 }
 0x2a5   :  { %1428 = vmatmul.mubr.f32.gmra.mrb[76].mxu0 %v1602_v49 }
 0x2a6   :  { %1430 = vmatprep.mubr.msk.f32.mxu0 %vm1803_vm0, %v1802_v0 }
 0x2a8   :  { %v1604_v63 = vpop.eup %1603 }
 0x2a9   :  { %1431 = vmatmul.mubr.f32.gmra.mrb[78].mxu0 %v1604_v63 }
 0x2aa   :  { %1433 = vmatprep.mubr.msk.f32.mxu0 %vm1803_vm0, %v1802_v0 }
 0x2ac   :  { %v1606_v19 = vpop.eup %1605 }
 0x2ad   :  { %1434 = vmatmul.mubr.f32.gmra.mrb[80].mxu0 %v1606_v19 }
 0x318   :  { %v801_v3 = vpop.f32.mrb[28].mxu0 }
 0x319   :  { %v802_v36 = vadd.f32 %v2240_v29, %v801_v3  ;;  %v1357_v43 = vpop.f32.mrb[29].mxu0 }
 0x31b   :  { %935 = vst [vmem:[#allocation14] sm:$0xff] %v802_v36 }
 0x31c   :  { %v806_v50 = vpop.f32.mrb[30].mxu0 }
 0x31d   :  { %v807_v51 = vadd.f32 %v2240_v29, %v806_v50  ;;  %v1360_v52 = vpop.f32.mrb[31].mxu0 }
 0x31f   :  { %936 = vst [vmem:[#allocation14 + $0x8] sm:$0xff] %v807_v51 }
 0x320   :  { %v811_v53 = vpop.f32.mrb[32].mxu0 }
 0x321   :  { %v812_v54 = vadd.f32 %v2240_v29, %v811_v53  ;;  %v1363_v55 = vpop.f32.mrb[33].mxu0 }
 0x323   :  { %937 = vst [vmem:[#allocation14 + $0x10] sm:$0xff] %v812_v54 }
 0x324   :  { %v816_v0 = vpop.f32.mrb[34].mxu0 }
 0x325   :  { %v817_v56 = vadd.f32 %v2240_v29, %v816_v0  ;;  %v1366_v57 = vpop.f32.mrb[35].mxu0 }
 0x327   :  { %938 = vst [vmem:[#allocation14 + $0x18] sm:$0xff] %v817_v56 }
 0x328   :  { %v821_v58 = vpop.f32.mrb[36].mxu0 }
 0x329   :  { %v822_v59 = vadd.f32 %v2240_v29, %v821_v58  ;;  %v1369_v60 = vpop.f32.mrb[37].mxu0 }
 0x32b   :  { %939 = vst [vmem:[#allocation14 + $0x20] sm:$0xff] %v822_v59 }
 0x32c   :  { %v826_v61 = vpop.f32.mrb[38].mxu0 }
 0x32d   :  { %v827_v62 = vadd.f32 %v2240_v29, %v826_v61  ;;  %v1372_v1 = vpop.f32.mrb[39].mxu0 }
 0x32f   :  { %940 = vst [vmem:[#allocation14 + $0x28] sm:$0xff] %v827_v62 }
 0x330   :  { %v831_v2 = vpop.f32.mrb[40].mxu0 }
 0x331   :  { %v832_v4 = vadd.f32 %v2240_v29, %v831_v2  ;;  %v1375_v5 = vpop.f32.mrb[41].mxu0 }
 0x333   :  { %941 = vst [vmem:[#allocation14 + $0x30] sm:$0xff] %v832_v4 }
 0x334   :  { %v836_v6 = vpop.f32.mrb[42].mxu0 }
 0x335   :  { %v837_v7 = vadd.f32 %v2240_v29, %v836_v6  ;;  %v1378_v8 = vpop.f32.mrb[43].mxu0 }
 0x337   :  { %942 = vst [vmem:[#allocation14 + $0x38] sm:$0xff] %v837_v7 }
 0x338   :  { %v841_v9 = vpop.f32.mrb[44].mxu0 }
 0x339   :  { %v842_v10 = vadd.f32 %v2240_v29, %v841_v9  ;;  %v1381_v12 = vpop.f32.mrb[45].mxu0 }
 0x33b   :  { %943 = vst [vmem:[#allocation14 + $0x40] sm:$0xff] %v842_v10 }
 0x33c   :  { %v846_v13 = vpop.f32.mrb[46].mxu0 }
 0x33d   :  { %v847_v14 = vadd.f32 %v2240_v29, %v846_v13  ;;  %v1384_v15 = vpop.f32.mrb[47].mxu0 }
 0x33f   :  { %944 = vst [vmem:[#allocation14 + $0x48] sm:$0xff] %v847_v14 }
 0x340   :  { %v851_v16 = vpop.f32.mrb[48].mxu0 }
 0x341   :  { %v852_v17 = vadd.f32 %v2240_v29, %v851_v16  ;;  %v1387_v18 = vpop.f32.mrb[49].mxu0 }
 0x343   :  { %945 = vst [vmem:[#allocation14 + $0x50] sm:$0xff] %v852_v17 }
 0x344   :  { %v856_v20 = vpop.f32.mrb[50].mxu0 }
 0x345   :  { %v857_v21 = vadd.f32 %v2240_v29, %v856_v20  ;;  %v1390_v22 = vpop.f32.mrb[51].mxu0 }
 0x347   :  { %946 = vst [vmem:[#allocation14 + $0x58] sm:$0xff] %v857_v21 }
 0x348   :  { %v861_v23 = vpop.f32.mrb[52].mxu0 }
 0x349   :  { %v862_v24 = vadd.f32 %v2240_v29, %v861_v23  ;;  %v1393_v25 = vpop.f32.mrb[53].mxu0 }
 0x34b   :  { %947 = vst [vmem:[#allocation14 + $0x60] sm:$0xff] %v862_v24 }
 0x34c   :  { %v866_v26 = vpop.f32.mrb[54].mxu0 }
 0x34d   :  { %v867_v27 = vadd.f32 %v2240_v29, %v866_v26  ;;  %v1396_v28 = vpop.f32.mrb[55].mxu0 }
 0x34f   :  { %948 = vst [vmem:[#allocation14 + $0x68] sm:$0xff] %v867_v27 }
 0x350   :  { %v871_v30 = vpop.f32.mrb[56].mxu0 }
 0x351   :  { %v872_v31 = vadd.f32 %v2240_v29, %v871_v30  ;;  %v1399_v32 = vpop.f32.mrb[57].mxu0 }
 0x353   :  { %949 = vst [vmem:[#allocation14 + $0x70] sm:$0xff] %v872_v31 }
 0x354   :  { %v876_v33 = vpop.f32.mrb[58].mxu0 }
 0x355   :  { %v877_v34 = vadd.f32 %v2240_v29, %v876_v33  ;;  %v1402_v35 = vpop.f32.mrb[59].mxu0 }
 0x357   :  { %950 = vst [vmem:[#allocation14 + $0x78] sm:$0xff] %v877_v34 }
 0x358   :  { %v881_v37 = vpop.f32.mrb[60].mxu0 }
 0x359   :  { %v882_v38 = vadd.f32 %v2240_v29, %v881_v37  ;;  %v1405_v39 = vpop.f32.mrb[61].mxu0 }
 0x35b   :  { %951 = vst [vmem:[#allocation14 + $0x80] sm:$0xff] %v882_v38 }
 0x35c   :  { %v886_v40 = vpop.f32.mrb[62].mxu0 }
 0x35d   :  { %v887_v41 = vadd.f32 %v2240_v29, %v886_v40  ;;  %v1408_v42 = vpop.f32.mrb[63].mxu0 }
 0x35f   :  { %952 = vst [vmem:[#allocation14 + $0x88] sm:$0xff] %v887_v41 }
 0x360   :  { %v891_v44 = vpop.f32.mrb[64].mxu0 }
 0x361   :  { %v892_v45 = vadd.f32 %v2240_v29, %v891_v44  ;;  %v1411_v46 = vpop.f32.mrb[65].mxu0 }
 0x363   :  { %953 = vst [vmem:[#allocation14 + $0x90] sm:$0xff] %v892_v45 }
 0x364   :  { %v896_v47 = vpop.f32.mrb[66].mxu0 }
 0x365   :  { %v897_v48 = vadd.f32 %v2240_v29, %v896_v47  ;;  %v1414_v11 = vpop.f32.mrb[67].mxu0 }
 0x367   :  { %954 = vst [vmem:[#allocation14 + $0x98] sm:$0xff] %v897_v48 }
 0x368   :  { %v901_v49 = vpop.f32.mrb[68].mxu0 }
 0x369   :  { %v902_v63 = vadd.f32 %v2240_v29, %v901_v49  ;;  %v1417_v19 = vpop.f32.mrb[69].mxu0 }
 0x36b   :  { %955 = vst [vmem:[#allocation14 + $0xa0] sm:$0xff] %v902_v63 }
 0x36c   :  { %v906_v3 = vpop.f32.mrb[70].mxu0 }
 0x36d   :  { %v907_v36 = vadd.f32 %v2240_v29, %v906_v3  ;;  %v1420_v43 = vpop.f32.mrb[71].mxu0 }
 0x36f   :  { %956 = vst [vmem:[#allocation14 + $0xa8] sm:$0xff] %v907_v36 }
 0x370   :  { %v911_v50 = vpop.f32.mrb[72].mxu0 }
 0x371   :  { %v912_v51 = vadd.f32 %v2240_v29, %v911_v50  ;;  %v1423_v52 = vpop.f32.mrb[73].mxu0 }
 0x373   :  { %957 = vst [vmem:[#allocation14 + $0xb0] sm:$0xff] %v912_v51 }
 0x374   :  { %v916_v53 = vpop.f32.mrb[74].mxu0 }
 0x375   :  { %v917_v54 = vadd.f32 %v2240_v29, %v916_v53  ;;  %v1426_v55 = vpop.f32.mrb[75].mxu0 }
 0x377   :  { %958 = vst [vmem:[#allocation14 + $0xb8] sm:$0xff] %v917_v54 }
 0x378   :  { %v921_v0 = vpop.f32.mrb[76].mxu0 }
 0x379   :  { %v922_v56 = vadd.f32 %v2240_v29, %v921_v0  ;;  %v1429_v57 = vpop.f32.mrb[77].mxu0 }
 0x37b   :  { %959 = vst [vmem:[#allocation14 + $0xc0] sm:$0xff] %v922_v56 }
 0x37c   :  { %v926_v58 = vpop.f32.mrb[78].mxu0 }
 0x37d   :  { %v927_v59 = vadd.f32 %v2240_v29, %v926_v58  ;;  %v1432_v60 = vpop.f32.mrb[79].mxu0 }
 0x37f   :  { %960 = vst [vmem:[#allocation14 + $0xc8] sm:$0xff] %v927_v59 }
 0x380   :  { %v931_v61 = vpop.f32.mrb[80].mxu0 }
 0x381   :  { %v932_v62 = vadd.f32 %v2240_v29, %v931_v61  ;;  %v1435_v1 = vpop.f32.mrb[81].mxu0 }
 0x383   :  { %961 = vst [vmem:[#allocation14 + $0xd0] sm:$0xff] %v932_v62 }
 0x384   :  { %1772 = shalt.err (!%p1769_p4)
}
 0x385   :  { %s1773_s19 = scalar_lea.hbm %s2291_s7, 3456 }
 0x386   :  { %p1774_p5 = scmp.ne.s32.totalorder %s2291_s7, %s1773_s19  ;;  %p1777_p6 = scmp.lt.u32.totalorder %s1773_s19, %s2291_s7 }
 0x388   :  { %p1779_p7 = pnand %p1777_p6, %p1774_p5 }
 0x38a   :  { %1782 = shalt.err (!%p1779_p7)
}
 0x38b   :  { %973 = dma.vmem_to_hbm [thread:$0]  %s968_s13, 3456, %s2291_s7, [#allocation4], %s1796_s24, %s1796_s24, %s1797_s25  }
 0x38c   :  { %1791 = dma.done.wait [#allocation4], 3456  }
 0x38d   :  { %1792 = vsyncadd [#allocation4], 4294963840 }
 0x38e   :  { %977 = vsyncpa [#allocation3], 1 }
 0x38f   :  { %978 = vsyncpa [#allocation6], 1 }
 0x390   :  { %979 = vsyncpa [#allocation9], 1 }
 0x391   :  { %980 = vsyncpa [#allocation12], 1 }
 0x392   :  { %981 = vsyncpa [#allocation4], 1 }

</bundles_post_ra>
